<compile_context>
chip_gen: v5e
topology: v5e:2x2
jax: 0.10.0
libtpu: 0.0.40
codegen_flags: <defaults>
</compile_context>

<pallas_src>
import functools

import jax
import jax.numpy as jnp
from jax.experimental import pallas as pl
from jax.experimental.pallas import tpu as pltpu

F32 = jnp.float32
BF16 = jnp.bfloat16

# ----------------------------- model config (small) -----------------------------
INPUT_NODE_DIM = 4     # raw atom features
POS_DIM = 3
NUM_MOL_FEATS = 3
CONCAT_POS = True      # concat_pos_to_node_dim
CONCAT_MOL = True      # concat_mol_to_node_dim
D_XP = INPUT_NODE_DIM + POS_DIM                      # concat(x, pos) width
D_IN = D_XP + (NUM_MOL_FEATS if CONCAT_MOL else 0)   # full embedded input width

NODE_HIDDEN = 32       # graph_config node width
EMBEDDING_DIM = 32     # graph_config.embedding_dim
NUM_CONVS = 2
CUTOFF = 3.0           # graph_config.cutoff
FC_LAYERS = 2          # fc_config.num_layers
FC_HIDDEN = 32         # fc_config.hidden_dim
OUTPUT_DIM = 8

PACK_W = NODE_HIDDEN   # packed-weight lane width (all hidden dims are 32 here)


# ----------------------------- packed-weight layout (shared: wrapper + kernel) ----------------
# (name, live rows); each segment start is rounded up to a multiple of 8 sublanes so every
# in-kernel static slice is sublane-aligned (no layout shuffles).
_PACK_LAYOUT = (
    ("w_xp", D_XP), ("w_em", NUM_MOL_FEATS), ("b_emb", 1),
    ("wm0", NODE_HIDDEN), ("bm0", 1), ("wu0", NODE_HIDDEN), ("bu0", 1),
    ("wm1", NODE_HIDDEN), ("bm1", 1), ("wu1", NODE_HIDDEN), ("bu1", 1),
    ("wno", NODE_HIDDEN), ("bno", 1),
    ("pt", 1), ("pb", 1),
    ("wmol", NUM_MOL_FEATS), ("bmol", 1),
    ("wfc1g", EMBEDDING_DIM), ("wfc1m", PACK_W), ("bfc1", 1),
    ("wfc2", FC_HIDDEN), ("bfc2", 1),
    ("wout", FC_HIDDEN),
)


def _round8(r):
    return (r + 7) & ~7


_PACK_OFFSETS = {}
_off = 0
for _name, _rows in _PACK_LAYOUT:
    _PACK_OFFSETS[_name] = (_off, _rows)
    _off += _round8(_rows)
PACK_ROWS = _off


# ----------------------------- helpers -----------------------------
def _gelu(y):
    # tanh-approximate GELU. TODO(synk): PyTorch nn.GELU default is exact erf GELU.
    c = jnp.float32(0.7978845608028654)
    return 0.5 * y * (1.0 + jnp.tanh(c * (y + 0.044715 * y * y * y)))


def _vmem():
    return pl.BlockSpec(memory_space=pltpu.MemorySpace.VMEM)


# ----------------------------- fused forward kernel -----------------------------
def _fused_forward_kernel(xpb_ref, pbt_ref, molx_ref, wp_ref, o_ref, *, cutoff):
    n = xpb_ref.shape[0]
    g = o_ref.shape[0]

    xpb = xpb_ref[...]          # [N, 8] = [x(4) | pos(3) | graph_id_f(1)]
    pbt = pbt_ref[...]          # [4, N] = [pos.T(3) ; graph_id_f(1)]
    mol_x = molx_ref[...]       # [G, M]
    wp = wp_ref[...]            # [PACK_ROWS, 32] packed weights (zero-cost static slices below)

    def sl(name):
        s, r = _PACK_OFFSETS[name]
        return wp[s:s + r, :]

    xpos = xpb[:, :D_XP]                     # concat(x, pos)  [N, 7]
    bidf = xpb[:, D_XP:D_XP + 1]             # [N, 1] graph id (float)
    bidtf = pbt[POS_DIM:POS_DIM + 1, :]      # [1, N] graph id (float)

    # --- dense radius-graph adjacency with cosine-cutoff envelope (all on-chip) ---
    # TODO(synk): radius_graph max_num_neighbors truncation is not enforced.
    # pairwise squared distance via 3 VPU broadcast-subtract-squares (frees the MXU)
    dx = xpb[:, INPUT_NODE_DIM + 0:INPUT_NODE_DIM + 1] - pbt[0:1, :]
    dy = xpb[:, INPUT_NODE_DIM + 1:INPUT_NODE_DIM + 2] - pbt[1:2, :]
    dz = xpb[:, INPUT_NODE_DIM + 2:INPUT_NODE_DIM + 3] - pbt[2:3, :]
    d2 = dx * dx + dy * dy + dz * dz
    d = jnp.sqrt(d2)

    row = jax.lax.broadcasted_iota(jnp.int32, (n, n), 0)
    col = jax.lax.broadcasted_iota(jnp.int32, (n, n), 1)
    # single fused boolean mask: within-cutoff & same graph & not-self (no f32 mask temporaries)
    mask = (d < cutoff) & (bidf == bidtf) & (row != col)
    env = 0.5 * (jnp.cos((jnp.pi / cutoff) * d) + 1.0)        # cosine-cutoff envelope
    adj = jnp.where(mask, env, 0.0).astype(BF16)              # bf16 only at the MXU boundary

    # --- in-kernel segment one-hots (built from graph ids; no HBM inputs, no transposes) ---
    grow = jax.lax.broadcasted_iota(jnp.int32, (g, n), 0).astype(F32)   # [G, N]
    gcol = jax.lax.broadcasted_iota(jnp.int32, (n, g), 1).astype(F32)   # [N, G]
    seg = (grow == bidtf).astype(F32)       # [G, N]  graph -> nodes
    segt = (gcol == bidf).astype(F32)       # [N, G]  node  -> graph

    # --- node embedding: concat(x, pos, repeat_interleave(mol_x)) @ W_embed, reassociated ---
    mol_emb = jnp.dot(mol_x, sl("w_em"), preferred_element_type=F32)    # [G, H] first ...
    h = (jnp.dot(xpos, sl("w_xp"), preferred_element_type=F32)
         + jnp.dot(segt, mol_emb, preferred_element_type=F32)           # ... then broadcast to nodes
         + sl("b_emb"))
    h = _gelu(h)

    # --- message-passing convolutions (residual gated stack) ---
    # TODO(synk): exact ScalarGNN internals (rbf basis, norms) unavailable; this is a
    # representative message-passing stack with the same I/O dims.
    conv_params = ((sl("wm0"), sl("bm0"), sl("wu0"), sl("bu0")),
                   (sl("wm1"), sl("bm1"), sl("wu1"), sl("bu1")))
    for wm, bm, wu, bu in conv_params:
        msg = _gelu(jnp.dot(h, wm, preferred_element_type=F32) + bm)
        agg = jnp.dot(adj, msg.astype(BF16), preferred_element_type=F32)   # neighbor sum
        upd = _gelu(jnp.dot(agg, wu, preferred_element_type=F32) + bu)
        h = h + upd

    # --- node output head ---
    h = jnp.dot(h, sl("wno"), preferred_element_type=F32) + sl("bno")      # [N, C]

    # --- AugSoftmaxAggregation pool (per-channel temperature + bias term in denominator) ---
    t = sl("pt")                         # [1, C]
    bt = sl("pb") * t                    # [1, C]
    z = h * t                            # [N, C]
    # single global per-channel stabilizer (one [N,C] reduce; no per-graph unrolled loop)
    m = jnp.maximum(jnp.max(z, axis=0, keepdims=True), bt)                 # [1, C]
    e = jnp.exp(z - m)                                                     # [N, C]
    denom = jnp.dot(seg, e, preferred_element_type=F32) + jnp.exp(bt - m)  # [G, C]
    num = jnp.dot(seg, e * h, preferred_element_type=F32)                  # [G, C]
    pooled = num / denom                                                   # exact division

    # --- mol_fc + gnn_mlp (concat folded into split fc1 weights) + output_fc ---
    molp = jnp.dot(mol_x, sl("wmol"), preferred_element_type=F32) + sl("bmol")   # [G, 32] (cols>=3 are 0)
    y = _gelu(jnp.dot(pooled, sl("wfc1g"), preferred_element_type=F32)
              + jnp.dot(molp, sl("wfc1m"), preferred_element_type=F32)
              + sl("bfc1"))
    y = _gelu(jnp.dot(y, sl("wfc2"), preferred_element_type=F32) + sl("bfc2"))
    out_full = jnp.dot(y, sl("wout"), preferred_element_type=F32)                # [G, 32] (cols>=8 are 0)
    o_ref[...] = out_full[:, :OUTPUT_DIM]                                        # output_fc (no bias)


# ----------------------------- parameters -----------------------------
def _uniform(key, shape, fan_in):
    bound = 1.0 / (float(fan_in) ** 0.5)
    return jax.random.uniform(key, shape, F32, -bound, bound)


def init_params(seed=5):
    # deterministic synthetic init (mirrors torch.manual_seed(seed) + Linear defaults)
    keys = iter(jax.random.split(jax.random.PRNGKey(seed), 64))

    def lin(din, dout, bias=True):
        w = _uniform(next(keys), (din, dout), din)
        b = _uniform(next(keys), (dout,), din) if bias else jnp.zeros((dout,), F32)
        return w, b

    p = {}
    p["w_embed"], p["b_embed"] = lin(D_IN, NODE_HIDDEN)
    for i in range(NUM_CONVS):
        p[f"conv{i}_wm"], p[f"conv{i}_bm"] = lin(NODE_HIDDEN, NODE_HIDDEN)
        p[f"conv{i}_wu"], p[f"conv{i}_bu"] = lin(NODE_HIDDEN, NODE_HIDDEN)
    p["w_node_out"], p["b_node_out"] = lin(NODE_HIDDEN, EMBEDDING_DIM)
    p["pool_t"] = jnp.ones((1, EMBEDDING_DIM), F32)        # temperature=1 (learnable)
    p["pool_b"] = jnp.full((1, EMBEDDING_DIM), 0.1, F32)   # bias=0.1
    p["w_mol"], p["b_mol"] = lin(NUM_MOL_FEATS, NUM_MOL_FEATS)
    p["w_fc1"], p["b_fc1"] = lin(EMBEDDING_DIM + NUM_MOL_FEATS, FC_HIDDEN)
    p["w_fc2"], p["b_fc2"] = lin(FC_HIDDEN, FC_HIDDEN)
    p["w_out"], _ = lin(FC_HIDDEN, OUTPUT_DIM, bias=False)  # output_fc has bias=False
    return p


def _pack_weights(p):
    """Pack all weights/biases into one [PACK_ROWS, 32] f32 slab (8-row-aligned segments)."""
    def colpad(a):
        r, c = a.shape
        return a if c == PACK_W else jnp.pad(a, ((0, 0), (0, PACK_W - c)))

    row = lambda b: b.reshape(1, -1)
    # fc1 mol-slice row-padded to 32 so the (zero-padded) molp slab multiplies through cleanly
    wfc1m = jnp.zeros((PACK_W, FC_HIDDEN), F32).at[:NUM_MOL_FEATS].set(
        p["w_fc1"][EMBEDDING_DIM:])

    pieces = {
        "w_xp": p["w_embed"][:D_XP],
        "w_em": p["w_embed"][D_XP:],
        "b_emb": row(p["b_embed"]),
        "wm0": p["conv0_wm"], "bm0": row(p["conv0_bm"]),
        "wu0": p["conv0_wu"], "bu0": row(p["conv0_bu"]),
        "wm1": p["conv1_wm"], "bm1": row(p["conv1_bm"]),
        "wu1": p["conv1_wu"], "bu1": row(p["conv1_bu"]),
        "wno": p["w_node_out"], "bno": row(p["b_node_out"]),
        "pt": p["pool_t"], "pb": p["pool_b"],
        "wmol": colpad(p["w_mol"]), "bmol": colpad(row(p["b_mol"])),
        "wfc1g": p["w_fc1"][:EMBEDDING_DIM],
        "wfc1m": wfc1m,
        "bfc1": row(p["b_fc1"]),
        "wfc2": p["w_fc2"], "bfc2": row(p["b_fc2"]),
        "wout": colpad(p["w_out"]),
    }
    buf = jnp.zeros((PACK_ROWS, PACK_W), F32)
    for name, rows in _PACK_LAYOUT:
        start, r = _PACK_OFFSETS[name]
        buf = buf.at[start:start + r, :].set(pieces[name].astype(F32))
    return buf


# ----------------------------- forward (single fused pallas_call) -----------------------------
@functools.partial(jax.jit, static_argnames=("num_graphs",))
def scalar_molecule_graph_model(params, x, pos, batch, ptr, mol_x, num_graphs):
    del ptr  # node->graph mapping is taken from `batch` (mol broadcast done in-kernel)
    n = x.shape[0]
    if x.ndim == 1:
        x = x[:, None]
    x = x.astype(F32)
    pos = pos.astype(F32)
    mol_x = mol_x.astype(F32)
    bidf = batch.astype(F32).reshape(n, 1)

    # only four operands reach the kernel: node slab, transposed slab, mol feats, packed weights
    xpb = jnp.concatenate([x, pos, bidf], axis=1)          # [N, 8] = [x | pos | graph_id]
    pbt = jnp.concatenate([pos.T, bidf.T], axis=0)         # [4, N] = [pos.T ; graph_id]
    wpack = _pack_weights(params)                          # [PACK_ROWS, 32]

    operands = (xpb, pbt, mol_x, wpack)
    return pl.pallas_call(
        functools.partial(_fused_forward_kernel, cutoff=float(CUTOFF)),
        out_shape=jax.ShapeDtypeStruct((num_graphs, OUTPUT_DIM), F32),
        in_specs=[_vmem() for _ in operands],
        out_specs=_vmem(),
        # 48 MiB: above v5e/v6e scoped defaults, below v7x's 64 MiB physical VMEM.
        compiler_params=pltpu.CompilerParams(vmem_limit_bytes=48 * 1024 * 1024),
    )(*operands)


# ----------------------------- main -----------------------------
if __name__ == "__main__":
    key = jax.random.PRNGKey(0)
    k1, k2, k3 = jax.random.split(key, 3)

    n_nodes, n_graphs = 24, 2
    x = jax.random.normal(k1, (n_nodes, INPUT_NODE_DIM), F32)
    pos = jax.random.normal(k2, (n_nodes, POS_DIM), F32) * 1.5
    batch = jnp.concatenate([jnp.zeros(12, jnp.int32), jnp.ones(12, jnp.int32)])
    ptr = jnp.array([0, 12, 24], jnp.int32)
    mol_x = jax.random.normal(k3, (n_graphs, NUM_MOL_FEATS), F32)

    params = init_params(seed=5)
    out = scalar_molecule_graph_model(params, x, pos, batch, ptr, mol_x, num_graphs=n_graphs)
    out = jax.block_until_ready(out)

    assert out.shape == (n_graphs, OUTPUT_DIM), out.shape
    assert bool(jnp.all(jnp.isfinite(out)))
    print("KERNEL_OK")
</pallas_src>

<mosaic_0001>
module attributes {stable_mosaic.version = 11 : i64} {
  func.func @_fused_forward_kernel(%arg0: memref<24x8xf32, #tpu.memory_space<vmem>>, %arg1: memref<4x24xf32, #tpu.memory_space<vmem>>, %arg2: memref<2x3xf32, #tpu.memory_space<vmem>>, %arg3: memref<400x32xf32, #tpu.memory_space<vmem>>, %arg4: memref<2x8xf32, #tpu.memory_space<vmem>>) attributes {dimension_semantics = [], scalar_prefetch = 0 : i64, scratch_operands = 0 : i64, tpu.core_type = #tpu.core_type<tc>} {
    %c0 = arith.constant 0 : index
    %c0_0 = arith.constant 0 : index
    %0 = vector.load %arg0[%c0, %c0_0] : memref<24x8xf32, #tpu.memory_space<vmem>>, vector<24x8xf32>
    %c0_1 = arith.constant 0 : index
    %c0_2 = arith.constant 0 : index
    %1 = vector.load %arg1[%c0_1, %c0_2] : memref<4x24xf32, #tpu.memory_space<vmem>>, vector<4x24xf32>
    %c0_3 = arith.constant 0 : index
    %c0_4 = arith.constant 0 : index
    %2 = vector.load %arg2[%c0_3, %c0_4] : memref<2x3xf32, #tpu.memory_space<vmem>>, vector<2x3xf32>
    %c0_5 = arith.constant 0 : index
    %c0_6 = arith.constant 0 : index
    %3 = vector.load %arg3[%c0_5, %c0_6] : memref<400x32xf32, #tpu.memory_space<vmem>>, vector<400x32xf32>
    %4 = vector.extract_strided_slice %0 {offsets = [0, 0], sizes = [24, 7], strides = [1, 1]} : vector<24x8xf32> to vector<24x7xf32>
    %5 = vector.extract_strided_slice %0 {offsets = [0, 7], sizes = [24, 1], strides = [1, 1]} : vector<24x8xf32> to vector<24x1xf32>
    %6 = vector.extract_strided_slice %1 {offsets = [3, 0], sizes = [1, 24], strides = [1, 1]} : vector<4x24xf32> to vector<1x24xf32>
    %7 = vector.extract_strided_slice %0 {offsets = [0, 4], sizes = [24, 1], strides = [1, 1]} : vector<24x8xf32> to vector<24x1xf32>
    %8 = vector.extract_strided_slice %1 {offsets = [0, 0], sizes = [1, 24], strides = [1, 1]} : vector<4x24xf32> to vector<1x24xf32>
    %9 = vector.broadcast %7 : vector<24x1xf32> to vector<24x24xf32>
    %10 = vector.broadcast %8 : vector<1x24xf32> to vector<24x24xf32>
    %11 = arith.subf %9, %10 : vector<24x24xf32>
    %12 = vector.extract_strided_slice %0 {offsets = [0, 5], sizes = [24, 1], strides = [1, 1]} : vector<24x8xf32> to vector<24x1xf32>
    %13 = vector.extract_strided_slice %1 {offsets = [1, 0], sizes = [1, 24], strides = [1, 1]} : vector<4x24xf32> to vector<1x24xf32>
    %14 = vector.broadcast %12 : vector<24x1xf32> to vector<24x24xf32>
    %15 = vector.broadcast %13 : vector<1x24xf32> to vector<24x24xf32>
    %16 = arith.subf %14, %15 : vector<24x24xf32>
    %17 = vector.extract_strided_slice %0 {offsets = [0, 6], sizes = [24, 1], strides = [1, 1]} : vector<24x8xf32> to vector<24x1xf32>
    %18 = vector.extract_strided_slice %1 {offsets = [2, 0], sizes = [1, 24], strides = [1, 1]} : vector<4x24xf32> to vector<1x24xf32>
    %19 = vector.broadcast %17 : vector<24x1xf32> to vector<24x24xf32>
    %20 = vector.broadcast %18 : vector<1x24xf32> to vector<24x24xf32>
    %21 = arith.subf %19, %20 : vector<24x24xf32>
    %22 = arith.mulf %11, %11 : vector<24x24xf32>
    %23 = arith.mulf %16, %16 : vector<24x24xf32>
    %24 = arith.addf %22, %23 : vector<24x24xf32>
    %25 = arith.mulf %21, %21 : vector<24x24xf32>
    %26 = arith.addf %24, %25 : vector<24x24xf32>
    %27 = math.sqrt %26 : vector<24x24xf32>
    %28 = tpu.iota {dimensions = array<i32: 0>} : vector<24x24xi32>
    %29 = tpu.iota {dimensions = array<i32: 1>} : vector<24x24xi32>
    %cst = arith.constant 3.000000e+00 : f32
    %30 = vector.broadcast %cst : f32 to vector<24x24xf32>
    %31 = arith.cmpf olt, %27, %30 : vector<24x24xf32>
    %32 = vector.broadcast %5 : vector<24x1xf32> to vector<24x24xf32>
    %33 = vector.broadcast %6 : vector<1x24xf32> to vector<24x24xf32>
    %34 = arith.cmpf oeq, %32, %33 : vector<24x24xf32>
    %35 = arith.andi %31, %34 : vector<24x24xi1>
    %36 = arith.cmpi ne, %28, %29 : vector<24x24xi32>
    %37 = arith.andi %35, %36 : vector<24x24xi1>
    %cst_7 = arith.constant 1.04719758 : f32
    %38 = vector.broadcast %cst_7 : f32 to vector<24x24xf32>
    %39 = arith.mulf %38, %27 : vector<24x24xf32>
    %40 = math.cos %39 : vector<24x24xf32>
    %cst_8 = arith.constant 1.000000e+00 : f32
    %41 = vector.broadcast %cst_8 : f32 to vector<24x24xf32>
    %42 = arith.addf %40, %41 : vector<24x24xf32>
    %cst_9 = arith.constant 5.000000e-01 : f32
    %43 = vector.broadcast %cst_9 : f32 to vector<24x24xf32>
    %44 = arith.mulf %43, %42 : vector<24x24xf32>
    %cst_10 = arith.constant 0.000000e+00 : f32
    %45 = vector.broadcast %cst_10 : f32 to vector<24x24xf32>
    %46 = arith.select %37, %44, %45 : vector<24x24xi1>, vector<24x24xf32>
    %47 = arith.truncf %46 : vector<24x24xf32> to vector<24x24xbf16>
    %48 = tpu.iota {dimensions = array<i32: 0>} : vector<2x24xi32>
    %49 = arith.sitofp %48 : vector<2x24xi32> to vector<2x24xf32>
    %50 = tpu.iota {dimensions = array<i32: 1>} : vector<24x2xi32>
    %51 = arith.sitofp %50 : vector<24x2xi32> to vector<24x2xf32>
    %52 = vector.broadcast %6 : vector<1x24xf32> to vector<2x24xf32>
    %53 = arith.cmpf oeq, %49, %52 : vector<2x24xf32>
    %54 = arith.extui %53 : vector<2x24xi1> to vector<2x24xi32>
    %55 = arith.sitofp %54 : vector<2x24xi32> to vector<2x24xf32>
    %56 = vector.broadcast %5 : vector<24x1xf32> to vector<24x2xf32>
    %57 = arith.cmpf oeq, %51, %56 : vector<24x2xf32>
    %58 = arith.extui %57 : vector<24x2xi1> to vector<24x2xi32>
    %59 = arith.sitofp %58 : vector<24x2xi32> to vector<24x2xf32>
    %60 = vector.extract_strided_slice %3 {offsets = [8, 0], sizes = [3, 32], strides = [1, 1]} : vector<400x32xf32> to vector<3x32xf32>
    %cst_11 = arith.constant dense<0.000000e+00> : vector<2x32xf32>
    %61 = tpu.matmul %2, %60, %cst_11 {dimension_numbers = #tpu.dot_dimension_numbers<[1], [0], [0], [1], [0, 0, 1, 1], [], []>} : vector<2x3xf32>, vector<3x32xf32>, vector<2x32xf32> -> vector<2x32xf32>
    %62 = vector.extract_strided_slice %3 {offsets = [0, 0], sizes = [7, 32], strides = [1, 1]} : vector<400x32xf32> to vector<7x32xf32>
    %cst_12 = arith.constant dense<0.000000e+00> : vector<24x32xf32>
    %63 = tpu.matmul %4, %62, %cst_12 {dimension_numbers = #tpu.dot_dimension_numbers<[1], [0], [0], [1], [0, 0, 1, 1], [], []>} : vector<24x7xf32>, vector<7x32xf32>, vector<24x32xf32> -> vector<24x32xf32>
    %cst_13 = arith.constant dense<0.000000e+00> : vector<24x32xf32>
    %64 = tpu.matmul %59, %61, %cst_13 {dimension_numbers = #tpu.dot_dimension_numbers<[1], [0], [0], [1], [0, 0, 1, 1], [], []>} : vector<24x2xf32>, vector<2x32xf32>, vector<24x32xf32> -> vector<24x32xf32>
    %65 = arith.addf %63, %64 : vector<24x32xf32>
    %66 = vector.extract_strided_slice %3 {offsets = [16, 0], sizes = [1, 32], strides = [1, 1]} : vector<400x32xf32> to vector<1x32xf32>
    %67 = vector.broadcast %66 : vector<1x32xf32> to vector<24x32xf32>
    %68 = arith.addf %65, %67 : vector<24x32xf32>
    %cst_14 = arith.constant 5.000000e-01 : f32
    %69 = vector.broadcast %cst_14 : f32 to vector<24x32xf32>
    %70 = arith.mulf %69, %68 : vector<24x32xf32>
    %cst_15 = arith.constant 4.471500e-02 : f32
    %71 = vector.broadcast %cst_15 : f32 to vector<24x32xf32>
    %72 = arith.mulf %71, %68 : vector<24x32xf32>
    %73 = arith.mulf %72, %68 : vector<24x32xf32>
    %74 = arith.mulf %73, %68 : vector<24x32xf32>
    %75 = arith.addf %68, %74 : vector<24x32xf32>
    %cst_16 = arith.constant 0.797884583 : f32
    %76 = vector.broadcast %cst_16 : f32 to vector<24x32xf32>
    %77 = arith.mulf %76, %75 : vector<24x32xf32>
    %78 = math.tanh %77 : vector<24x32xf32>
    %cst_17 = arith.constant 1.000000e+00 : f32
    %79 = vector.broadcast %cst_17 : f32 to vector<24x32xf32>
    %80 = arith.addf %79, %78 : vector<24x32xf32>
    %81 = arith.mulf %70, %80 : vector<24x32xf32>
    %82 = vector.extract_strided_slice %3 {offsets = [24, 0], sizes = [32, 32], strides = [1, 1]} : vector<400x32xf32> to vector<32x32xf32>
    %83 = vector.extract_strided_slice %3 {offsets = [56, 0], sizes = [1, 32], strides = [1, 1]} : vector<400x32xf32> to vector<1x32xf32>
    %84 = vector.extract_strided_slice %3 {offsets = [64, 0], sizes = [32, 32], strides = [1, 1]} : vector<400x32xf32> to vector<32x32xf32>
    %85 = vector.extract_strided_slice %3 {offsets = [96, 0], sizes = [1, 32], strides = [1, 1]} : vector<400x32xf32> to vector<1x32xf32>
    %86 = vector.extract_strided_slice %3 {offsets = [104, 0], sizes = [32, 32], strides = [1, 1]} : vector<400x32xf32> to vector<32x32xf32>
    %87 = vector.extract_strided_slice %3 {offsets = [136, 0], sizes = [1, 32], strides = [1, 1]} : vector<400x32xf32> to vector<1x32xf32>
    %88 = vector.extract_strided_slice %3 {offsets = [144, 0], sizes = [32, 32], strides = [1, 1]} : vector<400x32xf32> to vector<32x32xf32>
    %89 = vector.extract_strided_slice %3 {offsets = [176, 0], sizes = [1, 32], strides = [1, 1]} : vector<400x32xf32> to vector<1x32xf32>
    %cst_18 = arith.constant dense<0.000000e+00> : vector<24x32xf32>
    %90 = tpu.matmul %81, %82, %cst_18 {dimension_numbers = #tpu.dot_dimension_numbers<[1], [0], [0], [1], [0, 0, 1, 1], [], []>} : vector<24x32xf32>, vector<32x32xf32>, vector<24x32xf32> -> vector<24x32xf32>
    %91 = vector.broadcast %83 : vector<1x32xf32> to vector<24x32xf32>
    %92 = arith.addf %90, %91 : vector<24x32xf32>
    %cst_19 = arith.constant 5.000000e-01 : f32
    %93 = vector.broadcast %cst_19 : f32 to vector<24x32xf32>
    %94 = arith.mulf %93, %92 : vector<24x32xf32>
    %cst_20 = arith.constant 4.471500e-02 : f32
    %95 = vector.broadcast %cst_20 : f32 to vector<24x32xf32>
    %96 = arith.mulf %95, %92 : vector<24x32xf32>
    %97 = arith.mulf %96, %92 : vector<24x32xf32>
    %98 = arith.mulf %97, %92 : vector<24x32xf32>
    %99 = arith.addf %92, %98 : vector<24x32xf32>
    %cst_21 = arith.constant 0.797884583 : f32
    %100 = vector.broadcast %cst_21 : f32 to vector<24x32xf32>
    %101 = arith.mulf %100, %99 : vector<24x32xf32>
    %102 = math.tanh %101 : vector<24x32xf32>
    %cst_22 = arith.constant 1.000000e+00 : f32
    %103 = vector.broadcast %cst_22 : f32 to vector<24x32xf32>
    %104 = arith.addf %103, %102 : vector<24x32xf32>
    %105 = arith.mulf %94, %104 : vector<24x32xf32>
    %106 = arith.truncf %105 : vector<24x32xf32> to vector<24x32xbf16>
    %cst_23 = arith.constant dense<0.000000e+00> : vector<24x32xf32>
    %107 = tpu.matmul %47, %106, %cst_23 {dimension_numbers = #tpu.dot_dimension_numbers<[1], [0], [0], [1], [0, 0, 1, 1], [], []>} : vector<24x24xbf16>, vector<24x32xbf16>, vector<24x32xf32> -> vector<24x32xf32>
    %cst_24 = arith.constant dense<0.000000e+00> : vector<24x32xf32>
    %108 = tpu.matmul %107, %84, %cst_24 {dimension_numbers = #tpu.dot_dimension_numbers<[1], [0], [0], [1], [0, 0, 1, 1], [], []>} : vector<24x32xf32>, vector<32x32xf32>, vector<24x32xf32> -> vector<24x32xf32>
    %109 = vector.broadcast %85 : vector<1x32xf32> to vector<24x32xf32>
    %110 = arith.addf %108, %109 : vector<24x32xf32>
    %cst_25 = arith.constant 5.000000e-01 : f32
    %111 = vector.broadcast %cst_25 : f32 to vector<24x32xf32>
    %112 = arith.mulf %111, %110 : vector<24x32xf32>
    %cst_26 = arith.constant 4.471500e-02 : f32
    %113 = vector.broadcast %cst_26 : f32 to vector<24x32xf32>
    %114 = arith.mulf %113, %110 : vector<24x32xf32>
    %115 = arith.mulf %114, %110 : vector<24x32xf32>
    %116 = arith.mulf %115, %110 : vector<24x32xf32>
    %117 = arith.addf %110, %116 : vector<24x32xf32>
    %cst_27 = arith.constant 0.797884583 : f32
    %118 = vector.broadcast %cst_27 : f32 to vector<24x32xf32>
    %119 = arith.mulf %118, %117 : vector<24x32xf32>
    %120 = math.tanh %119 : vector<24x32xf32>
    %cst_28 = arith.constant 1.000000e+00 : f32
    %121 = vector.broadcast %cst_28 : f32 to vector<24x32xf32>
    %122 = arith.addf %121, %120 : vector<24x32xf32>
    %123 = arith.mulf %112, %122 : vector<24x32xf32>
    %124 = arith.addf %81, %123 : vector<24x32xf32>
    %cst_29 = arith.constant dense<0.000000e+00> : vector<24x32xf32>
    %125 = tpu.matmul %124, %86, %cst_29 {dimension_numbers = #tpu.dot_dimension_numbers<[1], [0], [0], [1], [0, 0, 1, 1], [], []>} : vector<24x32xf32>, vector<32x32xf32>, vector<24x32xf32> -> vector<24x32xf32>
    %126 = vector.broadcast %87 : vector<1x32xf32> to vector<24x32xf32>
    %127 = arith.addf %125, %126 : vector<24x32xf32>
    %cst_30 = arith.constant 5.000000e-01 : f32
    %128 = vector.broadcast %cst_30 : f32 to vector<24x32xf32>
    %129 = arith.mulf %128, %127 : vector<24x32xf32>
    %cst_31 = arith.constant 4.471500e-02 : f32
    %130 = vector.broadcast %cst_31 : f32 to vector<24x32xf32>
    %131 = arith.mulf %130, %127 : vector<24x32xf32>
    %132 = arith.mulf %131, %127 : vector<24x32xf32>
    %133 = arith.mulf %132, %127 : vector<24x32xf32>
    %134 = arith.addf %127, %133 : vector<24x32xf32>
    %cst_32 = arith.constant 0.797884583 : f32
    %135 = vector.broadcast %cst_32 : f32 to vector<24x32xf32>
    %136 = arith.mulf %135, %134 : vector<24x32xf32>
    %137 = math.tanh %136 : vector<24x32xf32>
    %cst_33 = arith.constant 1.000000e+00 : f32
    %138 = vector.broadcast %cst_33 : f32 to vector<24x32xf32>
    %139 = arith.addf %138, %137 : vector<24x32xf32>
    %140 = arith.mulf %129, %139 : vector<24x32xf32>
    %141 = arith.truncf %140 : vector<24x32xf32> to vector<24x32xbf16>
    %cst_34 = arith.constant dense<0.000000e+00> : vector<24x32xf32>
    %142 = tpu.matmul %47, %141, %cst_34 {dimension_numbers = #tpu.dot_dimension_numbers<[1], [0], [0], [1], [0, 0, 1, 1], [], []>} : vector<24x24xbf16>, vector<24x32xbf16>, vector<24x32xf32> -> vector<24x32xf32>
    %cst_35 = arith.constant dense<0.000000e+00> : vector<24x32xf32>
    %143 = tpu.matmul %142, %88, %cst_35 {dimension_numbers = #tpu.dot_dimension_numbers<[1], [0], [0], [1], [0, 0, 1, 1], [], []>} : vector<24x32xf32>, vector<32x32xf32>, vector<24x32xf32> -> vector<24x32xf32>
    %144 = vector.broadcast %89 : vector<1x32xf32> to vector<24x32xf32>
    %145 = arith.addf %143, %144 : vector<24x32xf32>
    %cst_36 = arith.constant 5.000000e-01 : f32
    %146 = vector.broadcast %cst_36 : f32 to vector<24x32xf32>
    %147 = arith.mulf %146, %145 : vector<24x32xf32>
    %cst_37 = arith.constant 4.471500e-02 : f32
    %148 = vector.broadcast %cst_37 : f32 to vector<24x32xf32>
    %149 = arith.mulf %148, %145 : vector<24x32xf32>
    %150 = arith.mulf %149, %145 : vector<24x32xf32>
    %151 = arith.mulf %150, %145 : vector<24x32xf32>
    %152 = arith.addf %145, %151 : vector<24x32xf32>
    %cst_38 = arith.constant 0.797884583 : f32
    %153 = vector.broadcast %cst_38 : f32 to vector<24x32xf32>
    %154 = arith.mulf %153, %152 : vector<24x32xf32>
    %155 = math.tanh %154 : vector<24x32xf32>
    %cst_39 = arith.constant 1.000000e+00 : f32
    %156 = vector.broadcast %cst_39 : f32 to vector<24x32xf32>
    %157 = arith.addf %156, %155 : vector<24x32xf32>
    %158 = arith.mulf %147, %157 : vector<24x32xf32>
    %159 = arith.addf %124, %158 : vector<24x32xf32>
    %160 = vector.extract_strided_slice %3 {offsets = [184, 0], sizes = [32, 32], strides = [1, 1]} : vector<400x32xf32> to vector<32x32xf32>
    %cst_40 = arith.constant dense<0.000000e+00> : vector<24x32xf32>
    %161 = tpu.matmul %159, %160, %cst_40 {dimension_numbers = #tpu.dot_dimension_numbers<[1], [0], [0], [1], [0, 0, 1, 1], [], []>} : vector<24x32xf32>, vector<32x32xf32>, vector<24x32xf32> -> vector<24x32xf32>
    %162 = vector.extract_strided_slice %3 {offsets = [216, 0], sizes = [1, 32], strides = [1, 1]} : vector<400x32xf32> to vector<1x32xf32>
    %163 = vector.broadcast %162 : vector<1x32xf32> to vector<24x32xf32>
    %164 = arith.addf %161, %163 : vector<24x32xf32>
    %165 = vector.extract_strided_slice %3 {offsets = [224, 0], sizes = [1, 32], strides = [1, 1]} : vector<400x32xf32> to vector<1x32xf32>
    %166 = vector.extract_strided_slice %3 {offsets = [232, 0], sizes = [1, 32], strides = [1, 1]} : vector<400x32xf32> to vector<1x32xf32>
    %167 = arith.mulf %166, %165 : vector<1x32xf32>
    %168 = vector.broadcast %165 : vector<1x32xf32> to vector<24x32xf32>
    %169 = arith.mulf %164, %168 : vector<24x32xf32>
    %cst_41 = arith.constant dense<0xFF800000> : vector<32xf32>
    %170 = vector.multi_reduction <maximumf>, %169, %cst_41 [0] : vector<24x32xf32> to vector<32xf32>
    %171 = vector.shape_cast %170 : vector<32xf32> to vector<1x32xf32>
    %172 = arith.maximumf %171, %167 : vector<1x32xf32>
    %173 = vector.broadcast %172 : vector<1x32xf32> to vector<24x32xf32>
    %174 = arith.subf %169, %173 : vector<24x32xf32>
    %175 = math.exp %174 : vector<24x32xf32>
    %cst_42 = arith.constant dense<0.000000e+00> : vector<2x32xf32>
    %176 = tpu.matmul %55, %175, %cst_42 {dimension_numbers = #tpu.dot_dimension_numbers<[1], [0], [0], [1], [0, 0, 1, 1], [], []>} : vector<2x24xf32>, vector<24x32xf32>, vector<2x32xf32> -> vector<2x32xf32>
    %177 = arith.subf %167, %172 : vector<1x32xf32>
    %178 = math.exp %177 : vector<1x32xf32>
    %179 = vector.broadcast %178 : vector<1x32xf32> to vector<2x32xf32>
    %180 = arith.addf %176, %179 : vector<2x32xf32>
    %181 = arith.mulf %175, %164 : vector<24x32xf32>
    %cst_43 = arith.constant dense<0.000000e+00> : vector<2x32xf32>
    %182 = tpu.matmul %55, %181, %cst_43 {dimension_numbers = #tpu.dot_dimension_numbers<[1], [0], [0], [1], [0, 0, 1, 1], [], []>} : vector<2x24xf32>, vector<24x32xf32>, vector<2x32xf32> -> vector<2x32xf32>
    %183 = arith.divf %182, %180 : vector<2x32xf32>
    %184 = vector.extract_strided_slice %3 {offsets = [240, 0], sizes = [3, 32], strides = [1, 1]} : vector<400x32xf32> to vector<3x32xf32>
    %cst_44 = arith.constant dense<0.000000e+00> : vector<2x32xf32>
    %185 = tpu.matmul %2, %184, %cst_44 {dimension_numbers = #tpu.dot_dimension_numbers<[1], [0], [0], [1], [0, 0, 1, 1], [], []>} : vector<2x3xf32>, vector<3x32xf32>, vector<2x32xf32> -> vector<2x32xf32>
    %186 = vector.extract_strided_slice %3 {offsets = [248, 0], sizes = [1, 32], strides = [1, 1]} : vector<400x32xf32> to vector<1x32xf32>
    %187 = vector.broadcast %186 : vector<1x32xf32> to vector<2x32xf32>
    %188 = arith.addf %185, %187 : vector<2x32xf32>
    %189 = vector.extract_strided_slice %3 {offsets = [256, 0], sizes = [32, 32], strides = [1, 1]} : vector<400x32xf32> to vector<32x32xf32>
    %cst_45 = arith.constant dense<0.000000e+00> : vector<2x32xf32>
    %190 = tpu.matmul %183, %189, %cst_45 {dimension_numbers = #tpu.dot_dimension_numbers<[1], [0], [0], [1], [0, 0, 1, 1], [], []>} : vector<2x32xf32>, vector<32x32xf32>, vector<2x32xf32> -> vector<2x32xf32>
    %191 = vector.extract_strided_slice %3 {offsets = [288, 0], sizes = [32, 32], strides = [1, 1]} : vector<400x32xf32> to vector<32x32xf32>
    %cst_46 = arith.constant dense<0.000000e+00> : vector<2x32xf32>
    %192 = tpu.matmul %188, %191, %cst_46 {dimension_numbers = #tpu.dot_dimension_numbers<[1], [0], [0], [1], [0, 0, 1, 1], [], []>} : vector<2x32xf32>, vector<32x32xf32>, vector<2x32xf32> -> vector<2x32xf32>
    %193 = arith.addf %190, %192 : vector<2x32xf32>
    %194 = vector.extract_strided_slice %3 {offsets = [320, 0], sizes = [1, 32], strides = [1, 1]} : vector<400x32xf32> to vector<1x32xf32>
    %195 = vector.broadcast %194 : vector<1x32xf32> to vector<2x32xf32>
    %196 = arith.addf %193, %195 : vector<2x32xf32>
    %cst_47 = arith.constant 5.000000e-01 : f32
    %197 = vector.broadcast %cst_47 : f32 to vector<2x32xf32>
    %198 = arith.mulf %197, %196 : vector<2x32xf32>
    %cst_48 = arith.constant 4.471500e-02 : f32
    %199 = vector.broadcast %cst_48 : f32 to vector<2x32xf32>
    %200 = arith.mulf %199, %196 : vector<2x32xf32>
    %201 = arith.mulf %200, %196 : vector<2x32xf32>
    %202 = arith.mulf %201, %196 : vector<2x32xf32>
    %203 = arith.addf %196, %202 : vector<2x32xf32>
    %cst_49 = arith.constant 0.797884583 : f32
    %204 = vector.broadcast %cst_49 : f32 to vector<2x32xf32>
    %205 = arith.mulf %204, %203 : vector<2x32xf32>
    %206 = math.tanh %205 : vector<2x32xf32>
    %cst_50 = arith.constant 1.000000e+00 : f32
    %207 = vector.broadcast %cst_50 : f32 to vector<2x32xf32>
    %208 = arith.addf %207, %206 : vector<2x32xf32>
    %209 = arith.mulf %198, %208 : vector<2x32xf32>
    %210 = vector.extract_strided_slice %3 {offsets = [328, 0], sizes = [32, 32], strides = [1, 1]} : vector<400x32xf32> to vector<32x32xf32>
    %cst_51 = arith.constant dense<0.000000e+00> : vector<2x32xf32>
    %211 = tpu.matmul %209, %210, %cst_51 {dimension_numbers = #tpu.dot_dimension_numbers<[1], [0], [0], [1], [0, 0, 1, 1], [], []>} : vector<2x32xf32>, vector<32x32xf32>, vector<2x32xf32> -> vector<2x32xf32>
    %212 = vector.extract_strided_slice %3 {offsets = [360, 0], sizes = [1, 32], strides = [1, 1]} : vector<400x32xf32> to vector<1x32xf32>
    %213 = vector.broadcast %212 : vector<1x32xf32> to vector<2x32xf32>
    %214 = arith.addf %211, %213 : vector<2x32xf32>
    %cst_52 = arith.constant 5.000000e-01 : f32
    %215 = vector.broadcast %cst_52 : f32 to vector<2x32xf32>
    %216 = arith.mulf %215, %214 : vector<2x32xf32>
    %cst_53 = arith.constant 4.471500e-02 : f32
    %217 = vector.broadcast %cst_53 : f32 to vector<2x32xf32>
    %218 = arith.mulf %217, %214 : vector<2x32xf32>
    %219 = arith.mulf %218, %214 : vector<2x32xf32>
    %220 = arith.mulf %219, %214 : vector<2x32xf32>
    %221 = arith.addf %214, %220 : vector<2x32xf32>
    %cst_54 = arith.constant 0.797884583 : f32
    %222 = vector.broadcast %cst_54 : f32 to vector<2x32xf32>
    %223 = arith.mulf %222, %221 : vector<2x32xf32>
    %224 = math.tanh %223 : vector<2x32xf32>
    %cst_55 = arith.constant 1.000000e+00 : f32
    %225 = vector.broadcast %cst_55 : f32 to vector<2x32xf32>
    %226 = arith.addf %225, %224 : vector<2x32xf32>
    %227 = arith.mulf %216, %226 : vector<2x32xf32>
    %228 = vector.extract_strided_slice %3 {offsets = [368, 0], sizes = [32, 32], strides = [1, 1]} : vector<400x32xf32> to vector<32x32xf32>
    %cst_56 = arith.constant dense<0.000000e+00> : vector<2x32xf32>
    %229 = tpu.matmul %227, %228, %cst_56 {dimension_numbers = #tpu.dot_dimension_numbers<[1], [0], [0], [1], [0, 0, 1, 1], [], []>} : vector<2x32xf32>, vector<32x32xf32>, vector<2x32xf32> -> vector<2x32xf32>
    %230 = vector.extract_strided_slice %229 {offsets = [0, 0], sizes = [2, 8], strides = [1, 1]} : vector<2x32xf32> to vector<2x8xf32>
    %c0_57 = arith.constant 0 : index
    %c0_58 = arith.constant 0 : index
    %231 = vector.load %arg4[%c0_57, %c0_58] : memref<2x8xf32, #tpu.memory_space<vmem>>, vector<2x8xf32>
    tpu.vector_store %arg4[%c0_57, %c0_58], %230 {strides = array<i32>} : memref<2x8xf32, #tpu.memory_space<vmem>>, vector<2x8xf32>,
    return
  }
}

</mosaic_0001>

<bundles_post_ra>
// kernel: scalar_molecule_graph_model.1
= control target key start
LH: loop header
LB: loop body
LE: loop exit
PB: predicated region body
PF: predicated region fallthrough
CT: control target
= control target key end

     0   :  { %vm704_vm0 = vcmask 1042432   ;;  %vm700_vm1 = vcmask 23552   ;;  %v1584_v2 = vmov 7   ;;  %s2196_s0 = inlined_call_operand.vmem [shape: f32[24,8], index: 0, kind: input, shape index: {}]   ;;  %s2197_s1 = inlined_call_operand.vmem [shape: f32[4,24], index: 1, kind: input, shape index: {}]   ;;  %s2198_s2 = inlined_call_operand.vmem [shape: f32[2,3], index: 2, kind: input, shape index: {}]   ;;  %s2199_s3 = inlined_call_operand.vmem [shape: f32[400,32], index: 3, kind: input, shape index: {}]   ;;  %s2200_s4 = inlined_call_operand.hbm [shape: f32[2,8], index: 4, kind: output, shape index: {}]  }
   0x1   :  { %v25_v0 = vld [vmem:[%s2199_s3 + $0x8] sm:$0xff]  ;;  %v23_v1 = vld [vmem:[%s2198_s2] sm:$0x3]  ;;  %1496 = vset.pattern.permute.xlu1 %v1584_v2  ;;  %1495 = vset.pattern.permute.xlu0 %v1584_v2  ;;  %v21_v3 = vld [vmem:[%s2196_s0 + $0x10] sm:$0xff] }
   0x2   :  { %v19_v4 = vld [vmem:[%s2196_s0] sm:$0xff]  ;;  %1445 = vmatpush.msk.msra.mxu0 %vm704_vm0, %v25_v0  ;;  %194 = vperm.xlu1 %1496, %v21_v3  }
   0x3   :  { %9 = vsyncpa [#allocation3], 0  ;;  %1446 = vmatmul.msk.f32.vlgmr.msra.gmra.mxu0 %vm700_vm1, %v23_v1  ;;  %186 = vperm.xlu0 %1495, %v19_v4   ;;  %v20_v5 = vld [vmem:[%s2196_s0 + $0x8] sm:$0xff]  ;;  %v1585_v6 = vmov 4   ;;  %v1586_v7 = vmov 5   ;;  %v1587_v8 = vmov 6   ;;  %v176_v11 = vlaneseq }
   0x4   :  { %1498 = vset.pattern.permute.xlu2 %v1585_v6  ;;  %v24_v9 = vld [vmem:[%s2199_s3] sm:$0xff]  ;;  %vm775_vm2 = vcmask 1046528   ;;  %vm768_vm3 = vcmask 56320   ;;  %vm738_vm5 = vcmask 1041408   ;;  %v1588_v24 = vmov 0.0   ;;  %s1596_s13 = smov [#allocation2]  }
   0x5   :  { %81 = vperm.xlu2 %1498, %v20_v5   ;;  %1451 = vmatpush.msk.msra.mxu2 %vm775_vm2, %v24_v9  ;;  %v1643_v12 = vand.u32 127, %v176_v11  ;;  %v1653_v17 = vld [vmem:[%s2197_s1] sm:$0xf]  ;;  %vm728_vm6 = vcmask 15360   ;;  %s1421_s14 = sshll.u32 %s1596_s13, 4  ;;  %s1422_s14 = int_to_ptr.vmem [resolvable:$true] %s1421_s14 }
   0x6   :  { %1452 = vmatmul.msk.f32.vlgmr.msra.gmra.mxu2 %vm768_vm3, %v19_v4  ;;  %v89_v18 = vperm.slane %v1653_v17, 0  ;;  %v105_v19 = vperm.slane %v1653_v17, 1  ;;  %v121_v28 = vperm.slane %v1653_v17, 2 }
   0x7   :  { %v687_v16 = vcvt.s32.f32 %v1643_v12 }
   0xa   :  { %1497 = vset.pattern.permute.xlu1 %v1585_v6 }
   0xb   :  { %190 = vperm.xlu0 %1495, %v20_v5   ;;  %76 = vperm.xlu1 %1497, %v19_v4  }
   0xd   :  { %1499 = vset.pattern.permute.xlu2 %v1586_v7 }
   0xe   :  { %94 = vperm.xlu2 %1499, %v19_v4   ;;  %1453 = vmatmul.msk.f32.gmra.mxu2 %vm768_vm3, %v20_v5 }
  0x13   :  { %1500 = vset.pattern.permute.xlu0 %v1586_v7  ;;  %1501 = vset.pattern.permute.xlu1 %v1587_v8 }
  0x14   :  { %98 = vperm.xlu0 %1500, %v20_v5   ;;  %110 = vperm.xlu1 %1501, %v19_v4  }
  0x16   :  { %1502 = vset.pattern.permute.xlu2 %v1587_v8  ;;  %1454 = vmatmul.msk.f32.gmra.mxu2 %vm768_vm3, %v21_v3 }
  0x17   :  { %114 = vperm.xlu2 %1502, %v20_v5  }
  0x1c   :  { %1503 = vset.pattern.permute.xlu1 %v1585_v6  ;;  %1505 = vset.pattern.permute.xlu0 %v1587_v8 }
  0x1d   :  { %86 = vperm.xlu1 %1503, %v21_v3   ;;  %118 = vperm.xlu0 %1505, %v21_v3  }
  0x1f   :  { %1504 = vset.pattern.permute.xlu2 %v1586_v7  ;;  %v1670_v7 = vperm.slane %v1653_v17, 3 }
  0x20   :  { %102 = vperm.xlu2 %1504, %v21_v3  }
  0x25   :  { %1506 = vset.pattern.permute.xlu0 %v1584_v2 }
  0x5f   :  { %v82_v10 = vpop.permute.xlu2 %81 }
  0x60   :  { %v91_v29 = vsub.f32 %v82_v10, %v89_v18 }
  0x62   :  { %v126_v35 = vmul.f32 %v91_v29, %v91_v29 }
  0x68   :  { %v95_v15 = vpop.permute.xlu2 %94 }
  0x69   :  { %v106_v23 = vsub.f32 %v95_v15, %v105_v19 }
  0x6b   :  { %v128_v31 = vmul.f32 %v106_v23, %v106_v23 }
  0x71   :  { %v115_v26 = vpop.permute.xlu2 %114 }
  0x72   :  { %v123_v32 = vsub.f32 %v115_v26, %v121_v28 }
  0x74   :  { %v1645_v13 = vpop.permute.xlu1 %194  ;;  %v135_v41 = vmul.f32 %v123_v32, %v123_v32 }
  0x75   :  { %v1647_v14 = vpop.permute.xlu0 %186  ;;  %vm693_vm8 = vcmp.eq.f32.partialorder %v687_v16, %v1645_v13 }
  0x76   :  { %vm691_vm4 = vcmp.eq.f32.partialorder %v687_v16, %v1647_v14  ;;  %v1444_v49 = vsel %vm693_vm8, 1.0, %v1588_v24  ;;  %vm198_vm13 = vcmp.eq.f32.partialorder %v1647_v14, %v1670_v7 }
  0x77   :  { %v1442_v25 = vsel %vm691_vm4, 1.0, %v1588_v24 }
  0x7a   :  { %v103_v43 = vpop.permute.xlu2 %102 }
  0x7b   :  { %v108_v46 = vsub.f32 %v103_v43, %v105_v19 }
  0x7d   :  { %v1658_v20 = vpop.permute.xlu0 %190  ;;  %v77_v21 = vpop.permute.xlu1 %76  ;;  %v130_v51 = vmul.f32 %v108_v46, %v108_v46 }
  0x7e   :  { %v90_v22 = vsub.f32 %v77_v21, %v89_v18  ;;  %vm692_vm7 = vcmp.eq.f32.partialorder %v687_v16, %v1658_v20  ;;  %vm199_vm15 = vcmp.eq.f32.partialorder %v1658_v20, %v1670_v7 }
  0x7f   :  { %v1443_v42 = vsel %vm692_vm7, 1.0, %v1588_v24  ;;  %vm200_vm7 = vcmp.eq.f32.partialorder %v1645_v13, %v1670_v7 }
  0x80   :  { %v725_v27 = vpop.f32.mrf.mxu0  ;;  %v125_v30 = vmul.f32 %v90_v22, %v90_v22 }
  0x81   :  { %1447 = vmatpush.msk.msra.mxu1 %vm738_vm5, %v725_v27 }
  0x82   :  { %1448 = vmatmul.msk.f32.vlgmr.msra.gmra.mxu1 %vm728_vm6, %v1442_v25  ;;  %v131_v36 = vadd.f32 %v128_v31, %v125_v30 }
  0x86   :  { %v99_v33 = vpop.permute.xlu0 %98  ;;  %v111_v34 = vpop.permute.xlu1 %110 }
  0x87   :  { %v107_v37 = vsub.f32 %v99_v33, %v105_v19  ;;  %v122_v38 = vsub.f32 %v111_v34, %v121_v28 }
  0x89   :  { %v129_v39 = vmul.f32 %v107_v37, %v107_v37  ;;  %v134_v40 = vmul.f32 %v122_v38, %v122_v38 }
  0x8a   :  { %1449 = vmatmul.msk.f32.gmra.mxu1 %vm728_vm6, %v1443_v42 }
  0x8b   :  { %v132_v44 = vadd.f32 %v129_v39, %v126_v35  ;;  %v137_v45 = vadd.f32 %v134_v40, %v131_v36 }
  0x8d   :  { %1507 = vrsqrt.f32 %v137_v45  ;;  %v138_v47 = vadd.f32 %v135_v41, %v132_v44  ;;  %vm147_vm9 = vcmp.eq.f32.partialorder %v137_v45, inf  ;;  %v150_v5 = vand.u32 2147483648, %v137_v45 }
  0x8e   :  { %vm149_vm10 = vcmp.eq.f32.partialorder %v137_v45, 0.0 }
  0x8f   :  { %1509 = vrsqrt.f32 %v138_v47  ;;  %v87_v48 = vpop.permute.xlu1 %86  ;;  %v119_v50 = vpop.permute.xlu0 %118  ;;  %vm159_vm11 = vcmp.eq.f32.partialorder %v138_v47, inf  ;;  %v162_v10 = vand.u32 2147483648, %v138_v47  ;;  %vm161_vm12 = vcmp.eq.f32.partialorder %v138_v47, 0.0 }
  0x90   :  { %v92_v52 = vsub.f32 %v87_v48, %v89_v18  ;;  %v124_v53 = vsub.f32 %v119_v50, %v121_v28 }
  0x92   :  { %v127_v54 = vmul.f32 %v92_v52, %v92_v52  ;;  %1450 = vmatmul.msk.f32.gmra.mxu1 %vm728_vm6, %v1444_v49  ;;  %v136_v55 = vmul.f32 %v124_v53, %v124_v53  ;;  %v1589_v52 = vmov 683565275  }
  0x93   :  { %v1508_v56 = vpop.eup %1507 }
  0x94   :  { %v133_v57 = vadd.f32 %v130_v51, %v127_v54  ;;  %v141_v58 = vmul.f32 %v1508_v56, %v137_v45  ;;  %v1590_v54 = vmov 2475754826  }
  0x95   :  { %v1510_v59 = vpop.eup %1509 }
  0x96   :  { %v139_v60 = vadd.f32 %v136_v55, %v133_v57  ;;  %v142_v61 = vmul.f32 %v1508_v56, %v141_v58  ;;  %v153_v62 = vmul.f32 %v1510_v59, %v138_v47  ;;  %v1592_v58 = vmov 2102212464  }
  0x98   :  { %1511 = vrsqrt.f32 %v139_v60  ;;  %v143_v63 = vmul.f32 0.5, %v142_v61  ;;  %v154_v0 = vmul.f32 %v1510_v59, %v153_v62  ;;  %vm171_vm5 = vcmp.eq.f32.partialorder %v139_v60, inf }
  0x99   :  { %v174_v39 = vand.u32 2147483648, %v139_v60  ;;  %vm173_vm6 = vcmp.eq.f32.partialorder %v139_v60, 0.0 }
  0x9a   :  { %v144_v1 = vsub.f32 1.5, %v143_v63  ;;  %v155_v2 = vmul.f32 0.5, %v154_v0 }
  0x9c   :  { %v145_v3 = vmul.f32 %v1508_v56, %v144_v1  ;;  %v156_v4 = vsub.f32 1.5, %v155_v2  ;;  %v1591_v56 = vmov 2131351028  }
  0x9e   :  { %v1512_v6 = vpop.eup %1511  ;;  %v146_v8 = vmul.f32 %v145_v3, %v137_v45  ;;  %v157_v9 = vmul.f32 %v1510_v59, %v156_v4 }
  0x9f   :  { %v165_v15 = vmul.f32 %v1512_v6, %v139_v60 }
  0xa0   :  { %v148_v16 = vsel %vm147_vm9, %v137_v45, %v146_v8  ;;  %v158_v18 = vmul.f32 %v157_v9, %v138_v47 }
  0xa1   :  { %v151_v19 = vsel %vm149_vm10, %v150_v5, %v148_v16  ;;  %v166_v21 = vmul.f32 %v1512_v6, %v165_v15  ;;  %v1594_v5 = vmov 1326507024  }
  0xa2   :  { %v160_v22 = vsel %vm159_vm11, %v138_v47, %v158_v18  ;;  %vm182_vm14 = vcmp.lt.f32.partialorder %v151_v19, 3.0  ;;  %v1674_v23 = vmul.f32 1.0471976, %v151_v19 }
  0xa3   :  { %v163_v17 = vsel %vm161_vm12, %v162_v10, %v160_v22  ;;  %vm1678_vm2 = vmand %vm182_vm14, %vm198_vm13  ;;  %v167_v26 = vmul.f32 0.5, %v166_v21 }
  0xa4   :  { %vm183_vm3 = vcmp.lt.f32.partialorder %v163_v17, 3.0  ;;  %v1682_v27 = vmul.f32 1.0471976, %v163_v17  ;;  %v213_v28 = vand.u32 2147483647, %v1674_v23  ;;  %v216_v14 = vand.u32 2139095040, %v1674_v23 }
  0xa5   :  { %vm1686_vm4 = vmand %vm183_vm3, %vm199_vm15  ;;  %v168_v30 = vsub.f32 1.5, %v167_v26 }
  0xa6   :  { %v217_v31 = vshrl.u32 %v216_v14, 23  ;;  %v220_v20 = vand.u32 8388607, %v213_v28  ;;  %v370_v32 = vand.u32 2139095040, %v1682_v27  ;;  %v367_v33 = vand.u32 2147483647, %v1682_v27 }
  0xa7   :  { %v169_v34 = vmul.f32 %v1512_v6, %v168_v30 }
  0xa8   :  { %v1432_v35 = vadd.s32 4294967169, %v217_v31  ;;  %v371_v36 = vshrl.u32 %v370_v32, 23  ;;  %v221_v37 = vor.u32 8388608, %v220_v20  ;;  %v374_v42 = vand.u32 8388607, %v367_v33 }
  0xa9   :  { %v170_v38 = vmul.f32 %v169_v34, %v139_v60 }
  0xaa   :  { %v223_v40 = vadd.s32 1, %v1432_v35  ;;  %v1435_v41 = vadd.s32 4294967169, %v371_v36  ;;  %v1698_v46 = vshll.u32 %v221_v37, 8  ;;  %v375_v50 = vor.u32 8388608, %v374_v42 }
  0xab   :  { %v172_v43 = vsel %vm171_vm5, %v139_v60, %v170_v38  ;;  %v1593_v60 = vmov 920167782  }
  0xac   :  { %vm224_vm8 = vcmp.gt.s32.totalorder %v223_v40, 0  ;;  %v377_v44 = vadd.s32 1, %v1435_v41  ;;  %v1700_v47 = vsel %vm173_vm6, %v174_v39, %v172_v43  ;;  %v262_v62 = vand.u32 65535, %v1698_v46 }
  0xad   :  { %v225_v45 = vsel %vm224_vm8, %v223_v40, 0  ;;  %vm184_vm10 = vcmp.lt.f32.partialorder %v1700_v47, 3.0  ;;  %v263_v34 = vshrl.u32 %v1698_v46, 16  ;;  %v1726_v35 = vshll.u32 %v375_v50, 8 }
  0xae   :  { %v227_v48 = vand.u32 31, %v225_v45  ;;  %vm378_vm9 = vcmp.gt.s32.totalorder %v377_v44, 0  ;;  %v226_v49 = vshrl.u32 %v225_v45, 5  ;;  %vm1703_vm11 = vmand %vm184_vm10, %vm200_vm7 }
  0xaf   :  { %v379_v63 = vsel %vm378_vm9, %v377_v44, 0 }
  0xb0   :  { %v228_v13 = vsub.s32 32, %v227_v48  ;;  %v230_v53 = vshll.u32 %v1589_v52, %v227_v48  ;;  %v233_v55 = vshll.u32 %v1590_v54, %v227_v48  ;;  %v236_v57 = vshll.u32 %v1591_v56, %v227_v48 }
  0xb1   :  { %v239_v59 = vshll.u32 %v1592_v58, %v227_v48  ;;  %v242_v61 = vshll.u32 %v1593_v60, %v227_v48  ;;  %vm245_vm12 = vcmp.lt.s32.totalorder %v226_v49, 1  ;;  %vm246_vm13 = vcmp.lt.s32.totalorder %v226_v49, 2 }
  0xb2   :  { %v229_v0 = vshrl.u32 %v1589_v52, %v228_v13  ;;  %v231_v1 = vshrl.u32 %v1590_v54, %v228_v13  ;;  %v234_v2 = vshrl.u32 %v1591_v56, %v228_v13  ;;  %v237_v3 = vshrl.u32 %v1592_v58, %v228_v13 }
  0xb3   :  { %v240_v4 = vshrl.u32 %v1593_v60, %v228_v13  ;;  %v243_v6 = vshrl.u32 %v1594_v5, %v228_v13  ;;  %vm248_vm14 = vcmp.lt.s32.totalorder %v226_v49, 4  ;;  %vm247_vm15 = vcmp.lt.s32.totalorder %v226_v49, 3 }
  0xb4   :  { %v232_v8 = vor.u32 %v231_v1, %v230_v53  ;;  %v235_v9 = vor.u32 %v234_v2, %v233_v55  ;;  %v238_v10 = vor.u32 %v237_v3, %v236_v57  ;;  %v1720_v18 = vand.u32 31, %v379_v63 }
  0xb5   :  { %v241_v15 = vor.u32 %v240_v4, %v239_v59  ;;  %v244_v16 = vor.u32 %v243_v6, %v242_v61  ;;  %v1733_v39 = vshrl.u32 %v379_v63, 5 }
  0xb6   :  { %v249_v19 = vsel %vm245_vm12, %v229_v0, %v232_v8  ;;  %v250_v21 = vsel %vm248_vm14, %v238_v10, 2102212464  ;;  %v253_v22 = vsel %vm245_vm12, %v232_v8, %v235_v9  ;;  %v257_v17 = vsel %vm245_vm12, %v235_v9, %v238_v10 }
  0xb7   :  { %v251_v26 = vsel %vm247_vm15, %v235_v9, %v250_v21  ;;  %v254_v14 = vsel %vm248_vm14, %v241_v15, 920167782  ;;  %v258_v30 = vsel %vm248_vm14, %v244_v16, 1326507024  ;;  %v1723_v31 = vsub.s32 32, %v1720_v18 }
  0xb8   :  { %v255_v20 = vsel %vm247_vm15, %v238_v10, %v254_v14  ;;  %v259_v32 = vsel %vm247_vm15, %v241_v15, %v258_v30  ;;  %v1729_v36 = vsel %vm246_vm13, %v249_v19, %v251_v26  ;;  %v384_v44 = vshll.u32 %v1589_v52, %v1720_v18 }
  0xb9   :  { %v256_v37 = vsel %vm246_vm13, %v253_v22, %v255_v20  ;;  %v260_v38 = vsel %vm246_vm13, %v257_v17, %v259_v32  ;;  %v385_v45 = vshrl.u32 %v1590_v54, %v1723_v31  ;;  %v387_v48 = vshll.u32 %v1590_v54, %v1720_v18 }
  0xba   :  { %v264_v40 = vand.u32 65535, %v260_v38  ;;  %v265_v41 = vshrl.u32 %v260_v38, 16  ;;  %v286_v42 = vand.u32 65535, %v256_v37  ;;  %v287_v43 = vshrl.u32 %v256_v37, 16 }
  0xbb   :  { %v388_v50 = vshrl.u32 %v1591_v56, %v1723_v31  ;;  %v390_v55 = vshll.u32 %v1591_v56, %v1720_v18  ;;  %v1745_v16 = vor.u32 %v385_v45, %v384_v44  ;;  %v1595_v19 = vmov 0  }
  0xbc   :  { %v266_v49 = vmul.u32 %v264_v40, %v262_v62  ;;  %v267_v13 = vmul.u32 %v265_v41, %v262_v62  ;;  %v268_v53 = vmul.u32 %v264_v40, %v263_v34  ;;  %v269_v57 = vmul.u32 %v265_v41, %v263_v34 }
  0xbd   :  { %v288_v59 = vmul.u32 %v286_v42, %v262_v62  ;;  %v289_v61 = vmul.u32 %v287_v43, %v262_v62  ;;  %v290_v63 = vmul.u32 %v286_v42, %v263_v34  ;;  %v291_v3 = vmul.u32 %v287_v43, %v263_v34 }
  0xbe   :  { %v270_v0 = vshll.u32 %v267_v13, 16  ;;  %v271_v1 = vshrl.u32 %v267_v13, 16  ;;  %v272_v2 = vshll.u32 %v268_v53, 16  ;;  %v273_v4 = vshrl.u32 %v268_v53, 16 }
  0xbf   :  { %v292_v6 = vshll.u32 %v289_v61, 16  ;;  %v293_v8 = vshrl.u32 %v289_v61, 16  ;;  %v294_v9 = vshll.u32 %v290_v63, 16  ;;  %v295_v15 = vshrl.u32 %v290_v63, 16 }
  0xc0   :  { %vm274_vm3 = vc.u32 %v266_v49, %v270_v0  ;;  %v276_v10 = vadd.s32 %v270_v0, %v266_v49  ;;  %v391_v62 = vshrl.u32 %v1592_v58, %v1723_v31  ;;  %v393_v14 = vshll.u32 %v1592_v58, %v1720_v18 }
  0xc1   :  { %v275_v21 = vsel %vm274_vm3, 1, %v1595_v19  ;;  %vm296_vm5 = vc.u32 %v288_v59, %v292_v6  ;;  %v298_v22 = vadd.s32 %v292_v6, %v288_v59  ;;  %v389_v32 = vor.u32 %v388_v50, %v387_v48 }
  0xc2   :  { %v277_v17 = vadd.s32 %v275_v21, %v269_v57  ;;  %vm278_vm6 = vc.u32 %v276_v10, %v272_v2  ;;  %v297_v26 = vsel %vm296_vm5, 1, %v1595_v19  ;;  %v392_v38 = vor.u32 %v391_v62, %v390_v55 }
  0xc3   :  { %v279_v30 = vsel %vm278_vm6, 1, %v1595_v19  ;;  %v299_v20 = vadd.s32 %v297_v26, %v291_v3  ;;  %vm300_vm7 = vc.u32 %v298_v22, %v294_v9  ;;  %v394_v40 = vshrl.u32 %v1593_v60, %v1723_v31 }
  0xc4   :  { %v281_v34 = vadd.s32 %v279_v30, %v277_v17  ;;  %v301_v37 = vsel %vm300_vm7, 1, %v1595_v19  ;;  %v396_v42 = vshll.u32 %v1593_v60, %v1720_v18  ;;  %v397_v43 = vshrl.u32 %v1594_v5, %v1723_v31 }
  0xc5   :  { %v303_v41 = vadd.s32 %v301_v37, %v299_v20  ;;  %vm399_vm8 = vcmp.lt.s32.totalorder %v1733_v39, 1  ;;  %v1762_v45 = vadd.s32 %v298_v22, %v294_v9  ;;  %v395_v48 = vor.u32 %v394_v40, %v393_v14 }
  0xc6   :  { %v282_v44 = vadd.s32 %v281_v34, %v271_v1  ;;  %vm401_vm9 = vcmp.lt.s32.totalorder %v1733_v39, 3  ;;  %v398_v49 = vor.u32 %v397_v43, %v396_v42  ;;  %vm400_vm10 = vcmp.lt.s32.totalorder %v1733_v39, 2 }
  0xc7   :  { %v304_v50 = vadd.s32 %v303_v41, %v293_v8  ;;  %vm402_vm12 = vcmp.lt.s32.totalorder %v1733_v39, 4  ;;  %v407_v18 = vsel %vm399_vm8, %v1745_v16, %v389_v32  ;;  %v416_v59 = vand.u32 65535, %v1726_v35 }
  0xc8   :  { %v1767_v13 = vadd.s32 %v282_v44, %v273_v4  ;;  %v408_v53 = vsel %vm402_vm12, %v395_v48, 920167782  ;;  %v417_v61 = vshrl.u32 %v1726_v35, 16  ;;  %v306_v63 = vmul.u32 %v1698_v46, %v1729_v36 }
  0xc9   :  { %v305_v55 = vadd.s32 %v304_v50, %v295_v15  ;;  %v409_v57 = vsel %vm401_vm9, %v392_v38, %v408_v53  ;;  %v411_v1 = vsel %vm399_vm8, %v389_v32, %v392_v38  ;;  %v412_v3 = vsel %vm402_vm12, %v398_v49, 1326507024 }
  0xca   :  { %vm308_vm13 = vc.u32 %v1767_v13, %v1762_v45  ;;  %v410_v0 = vsel %vm400_vm10, %v407_v18, %v409_v57  ;;  %v413_v8 = vsel %vm401_vm9, %v395_v48, %v412_v3  ;;  %v383_v21 = vshrl.u32 %v1589_v52, %v1723_v31 }
  0xcb   :  { %v309_v2 = vadd.s32 1, %v305_v55  ;;  %v440_v4 = vand.u32 65535, %v410_v0  ;;  %v441_v6 = vshrl.u32 %v410_v0, 16  ;;  %v414_v46 = vsel %vm400_vm10, %v411_v1, %v413_v8 }
  0xcc   :  { %v418_v10 = vand.u32 65535, %v414_v46  ;;  %v419_v15 = vshrl.u32 %v414_v46, 16  ;;  %v404_v41 = vsel %vm402_vm12, %v392_v38, 2102212464  ;;  %v403_v31 = vsel %vm399_vm8, %v383_v21, %v1745_v16 }
  0xcd   :  { %v310_v9 = vsel %vm308_vm13, %v309_v2, %v305_v55  ;;  %v442_v22 = vmul.u32 %v440_v4, %v416_v59  ;;  %v443_v62 = vmul.u32 %v441_v6, %v416_v59  ;;  %v444_v17 = vmul.u32 %v440_v4, %v417_v61 }
  0xce   :  { %v311_v36 = vadd.s32 %v310_v9, %v306_v63  ;;  %v420_v14 = vmul.u32 %v418_v10, %v416_v59  ;;  %v421_v30 = vmul.u32 %v419_v15, %v416_v59  ;;  %v422_v20 = vmul.u32 %v418_v10, %v417_v61 }
  0xcf   :  { %v445_v34 = vmul.u32 %v441_v6, %v417_v61  ;;  %v446_v37 = vshll.u32 %v443_v62, 16  ;;  %v423_v42 = vmul.u32 %v419_v15, %v417_v61  ;;  %v448_v48 = vshll.u32 %v444_v17, 16 }
  0xd0   :  { %v312_v26 = vadd.s32 536870912, %v311_v36  ;;  %v424_v43 = vshll.u32 %v421_v30, 16  ;;  %v426_v44 = vshll.u32 %v422_v20, 16  ;;  %v405_v53 = vsel %vm401_vm9, %v389_v32, %v404_v41 }
  0xd1   :  { %vm450_vm14 = vc.u32 %v442_v22, %v446_v37  ;;  %v452_v55 = vadd.s32 %v446_v37, %v442_v22  ;;  %v425_v61 = vshrl.u32 %v421_v30, 16  ;;  %v427_v16 = vshrl.u32 %v422_v20, 16 }
  0xd2   :  { %v1794_v40 = vshrl.u32 %v312_v26, 30  ;;  %vm428_vm15 = vc.u32 %v420_v14, %v424_v43  ;;  %v430_v49 = vadd.s32 %v424_v43, %v420_v14  ;;  %v451_v18 = vsel %vm450_vm14, 1, %v1595_v19 }
  0xd3   :  { %v429_v38 = vsel %vm428_vm15, 1, %v1595_v19  ;;  %v453_v57 = vadd.s32 %v451_v18, %v445_v34  ;;  %v447_v1 = vshrl.u32 %v443_v62, 16  ;;  %vm454_vm5 = vc.u32 %v452_v55, %v448_v48 }
  0xd4   :  { %v314_v50 = vshll.u32 %v1794_v40, 30  ;;  %v431_v63 = vadd.s32 %v429_v38, %v423_v42  ;;  %vm432_vm3 = vc.u32 %v430_v49, %v426_v44  ;;  %v455_v4 = vsel %vm454_vm5, 1, %v1595_v19 }
  0xd5   :  { %v433_v0 = vsel %vm432_vm3, 1, %v1595_v19  ;;  %v449_v6 = vshrl.u32 %v444_v17, 16  ;;  %v457_v32 = vadd.s32 %v455_v4, %v453_v57  ;;  %v456_v46 = vadd.s32 %v452_v55, %v448_v48 }
  0xd6   :  { %v315_v59 = vsub.s32 %v311_v36, %v314_v50  ;;  %v435_v3 = vadd.s32 %v433_v0, %v431_v63  ;;  %v406_v36 = vsel %vm400_vm10, %v403_v31, %v405_v53  ;;  %v307_v14 = vadd.s32 %v1762_v45, %v1767_v13  ;;  %v30_v0 = vld [vmem:[%s2199_s3 + $0x30] sm:$0xff] }
  0xd7   :  { %v458_v15 = vadd.s32 %v457_v32, %v447_v1  ;;  %v460_v62 = vmul.u32 %v1726_v35, %v406_v36  ;;  %vm215_vm9 = vcmp.lt.s32.totalorder %v1674_v23, 0  ;;  %vm1819_vm12 = vcmp.le.f32.partialorder %v213_v28, 0.7853982  ;;  %859 = vmatpush.msra.mxu3 %v30_v0  ;;  %v29_v28 = vld [vmem:[%s2199_s3 + $0x28] sm:$0xff] }
  0xd8   :  { %vm316_vm6 = vcmp.lt.s32.totalorder %v315_v59, 0  ;;  %v317_v2 = vsub.s32 0, %v315_v59  ;;  %v436_v9 = vadd.s32 %v435_v3, %v425_v61  ;;  %v28_v3 = vld [vmem:[%s2199_s3 + $0x20] sm:$0xff]  ;;  %vm369_vm14 = vcmp.lt.s32.totalorder %v1682_v27, 0 }
  0xd9   :  { %v459_v26 = vadd.s32 %v458_v15, %v449_v6  ;;  %860 = vmatpush.msra.mxu3 %v29_v28  ;;  %vm1861_vm15 = vcmp.le.f32.partialorder %v367_v33, 0.7853982 }
  0xda   :  { %v318_v8 = vsel %vm316_vm6, %v317_v2, %v315_v59  ;;  %v437_v21 = vadd.s32 %v436_v9, %v427_v16  ;;  %v27_v9 = vld [vmem:[%s2199_s3 + $0x18] sm:$0xff] }
  0xdb   :  { %v319_v10 = vclz %v318_v8  ;;  %v463_v17 = vadd.s32 1, %v459_v26  ;;  %861 = vmatpush.msra.mxu3 %v28_v3 }
  0xdc   :  { %vm462_vm7 = vc.u32 %v437_v21, %v456_v46  ;;  %v461_v32 = vadd.s32 %v456_v46, %v437_v21  ;;  %v796_v21 = vpop.f32.mrf.mxu2 }
  0xdd   :  { %v1433_v22 = vadd.s32 4294967294, %v319_v10  ;;  %v464_v41 = vsel %vm462_vm7, %v463_v17, %v459_v26  ;;  %v1841_v17 = vmul.f32 1.0471976, %v1700_v47  ;;  %862 = vmatpush.msra.mxu3 %v27_v9 }
  0xde   :  { %v465_v42 = vadd.s32 %v464_v41, %v460_v62 }
  0xdf   :  { %vm1434_vm8 = vcmp.lt.s32.totalorder %v1433_v22, 0 }
  0xe0   :  { %v322_v30 = vsel %vm1434_vm8, 0, %v1433_v22  ;;  %v466_v31 = vadd.s32 536870912, %v465_v42  ;;  %vm356_vm8 = vweird.f32 %v1674_v23 }
  0xe1   :  { %v323_v20 = vsub.s32 32, %v322_v30  ;;  %v324_v34 = vshll.u32 %v315_v59, %v322_v30  ;;  %v327_v37 = vsub.s32 4294967266, %v322_v30 }
  0xe2   :  { %v1813_v50 = vshrl.u32 %v466_v31, 30 }
  0xe3   :  { %v325_v39 = vshrl.u32 %v307_v14, %v323_v20  ;;  %v328_v43 = vadd.s32 127, %v327_v37  ;;  %v337_v37 = vsub.s32 4, %v1794_v40 }
  0xe4   :  { %v468_v18 = vshll.u32 %v1813_v50, 30  ;;  %v799_v0 = vpop.f32.mrf.mxu2 }
  0xe5   :  { %v326_v44 = vor.u32 %v325_v39, %v324_v34  ;;  %v329_v48 = vshll.u32 %v328_v43, 23  ;;  %v524_v39 = vand.u32 2139095040, %v1841_v17 }
  0xe6   :  { %v469_v13 = vsub.s32 %v465_v42, %v468_v18  ;;  %v26_v42 = vld [vmem:[%s2199_s3 + $0x10] sm:$0xff] }
  0xe7   :  { %v330_v35 = vor.u32 4788187, %v329_v48  ;;  %v333_v49 = vcvt.s32.f32 %v326_v44  ;;  %v1848_v48 = vperm.slane %v26_v42, 0 }
  0xe8   :  { %vm470_vm10 = vcmp.lt.s32.totalorder %v469_v13, 0  ;;  %v471_v38 = vsub.s32 0, %v469_v13 }
  0xe9   :  { %v331_v45 = vand.u32 2147483647, %v330_v35  ;;  %v338_v35 = vsel %vm215_vm9, %v337_v37, %v1794_v40 }
  0xea   :  { %v472_v59 = vsel %vm470_vm10, %v471_v38, %v469_v13  ;;  %v340_v38 = vsel %vm1819_vm12, 0, %v338_v35  ;;  %vm837_vm10 = vcmask 261120  }
  0xeb   :  { %v334_v53 = vmul.f32 %v333_v49, %v331_v45  ;;  %v473_v63 = vclz %v472_v59  ;;  %v525_v45 = vshrl.u32 %v524_v39, 23  ;;  %v357_v55 = vand.u32 3, %v340_v38 }
  0xec   :  { %v802_v39 = vpop.f32.mrf.mxu2 }
  0xed   :  { %v335_v57 = vxor.u32 2147483648, %v334_v53  ;;  %v1436_v2 = vadd.s32 4294967294, %v473_v63  ;;  %vm359_vm3 = vcmp.eq.s32.totalorder %v357_v55, 0  ;;  %vm362_vm5 = vcmp.eq.s32.totalorder %v357_v55, 2 }
  0xee   :  { %vm358_vm7 = vcmp.lt.s32.totalorder %v357_v55, 2 }
  0xef   :  { %v336_v61 = vsel %vm215_vm9, %v335_v57, %v334_v53  ;;  %vm1437_vm13 = vcmp.lt.s32.totalorder %v1436_v2, 0 }
  0xf0   :  { %v339_v16 = vsel %vm1819_vm12, %v1674_v23, %v336_v61  ;;  %v476_v8 = vsel %vm1437_vm13, 0, %v1436_v2  ;;  %v1438_v2 = vadd.s32 4294967169, %v525_v45 }
  0xf1   :  { %v341_v1 = vmul.f32 %v339_v16, %v339_v16  ;;  %v477_v15 = vsub.s32 32, %v476_v8  ;;  %v478_v22 = vshll.u32 %v469_v13, %v476_v8  ;;  %v481_v26 = vsub.s32 4294967266, %v476_v8 }
  0xf3   :  { %v342_v4 = vmul.f32 -0.001358992, %v341_v1  ;;  %v349_v6 = vmul.f32 -0.00019511016, %v341_v1  ;;  %v479_v14 = vshrl.u32 %v461_v32, %v477_v15  ;;  %v482_v46 = vadd.s32 127, %v481_v26 }
  0xf5   :  { %v343_v10 = vadd.f32 0.041655596, %v342_v4  ;;  %v350_v36 = vadd.f32 0.008332121, %v349_v6  ;;  %v480_v34 = vor.u32 %v479_v14, %v478_v22  ;;  %v483_v41 = vshll.u32 %v482_v46, 23 }
  0xf6   :  { %v491_v6 = vsub.s32 4, %v1813_v50 }
  0xf7   :  { %v351_v62 = vmul.f32 %v350_v36, %v341_v1  ;;  %v344_v30 = vmul.f32 %v343_v10, %v341_v1  ;;  %v484_v43 = vor.u32 4788187, %v483_v41  ;;  %v487_v31 = vcvt.s32.f32 %v480_v34 }
  0xf8   :  { %v531_v10 = vadd.s32 1, %v1438_v2  ;;  %v1894_v2 = vshrl.u32 %v176_v11, 7 }
  0xf9   :  { %v352_v20 = vadd.f32 -0.16666654, %v351_v62  ;;  %v345_v44 = vadd.f32 -0.4999988, %v344_v30  ;;  %v485_v49 = vand.u32 2147483647, %v484_v43 }
  0xfa   :  { %vm532_vm6 = vcmp.gt.s32.totalorder %v531_v10, 0 }
  0xfb   :  { %v353_v47 = vmul.f32 %v352_v20, %v341_v1  ;;  %v488_v53 = vmul.f32 %v487_v31, %v485_v49  ;;  %v346_v57 = vmul.f32 %v345_v44, %v341_v1  ;;  %v533_v45 = vsel %vm532_vm6, %v531_v10, 0 }
  0xfc   :  { %v535_v55 = vand.u32 31, %v533_v45 }
  0xfd   :  { %v354_v59 = vadd.f32 1.0, %v353_v47  ;;  %v489_v40 = vxor.u32 2147483648, %v488_v53  ;;  %v347_v3 = vadd.f32 1.0, %v346_v57 }
  0xfe   :  { %v550_v25 = vshll.u32 %v1593_v60, %v535_v55 }
  0xff   :  { %v759_v18 = vpop.f32.mrf.mxu1  ;;  %v490_v1 = vsel %vm369_vm14, %v489_v40, %v488_v53  ;;  %v355_v4 = vmul.f32 %v354_v59, %v339_v16  ;;  %v363_v14 = vxor.u32 2147483648, %v347_v3  ;;  %v492_v16 = vsel %vm369_vm14, %v491_v6, %v1813_v50 }
 0x100   :  { %v797_v13 = vadd.f32 %v796_v21, %v759_v18  ;;  %v493_v33 = vsel %vm1861_vm15, %v1682_v27, %v490_v1  ;;  %v494_v41 = vsel %vm1861_vm15, 0, %v492_v16  ;;  %vm510_vm14 = vweird.f32 %v1682_v27 }
 0x101   :  { %v495_v8 = vmul.f32 %v493_v33, %v493_v33  ;;  %v360_v62 = vxor.u32 2147483648, %v355_v4  ;;  %v364_v43 = vsel %vm362_vm5, %v363_v14, %v355_v4  ;;  %v511_v18 = vand.u32 3, %v494_v41 }
 0x102   :  { %v1857_v61 = vadd.f32 %v1848_v48, %v797_v13  ;;  %vm204_vm15 = vcmp.ne.s32.totalorder %v1894_v2, %v1643_v12 }
 0x103   :  { %v496_v22 = vmul.f32 -0.001358992, %v495_v8  ;;  %v503_v26 = vmul.f32 -0.00019511016, %v495_v8  ;;  %v361_v50 = vsel %vm359_vm3, %v347_v3, %v360_v62  ;;  %vm516_vm9 = vcmp.eq.s32.totalorder %v511_v18, 2  ;;  %vm207_vm5 = vmand %vm1678_vm2, %vm204_vm15 }
 0x104   :  { %v812_v28 = vmul.f32 0.044715, %v1857_v61  ;;  %v365_v38 = vsel %vm358_vm7, %v361_v50, %v364_v43  ;;  %vm513_vm12 = vcmp.eq.s32.totalorder %v511_v18, 0  ;;  %vm512_vm13 = vcmp.lt.s32.totalorder %v511_v18, 2 }
 0x105   :  { %v497_v30 = vadd.f32 0.041655596, %v496_v22  ;;  %v504_v20 = vadd.f32 0.008332121, %v503_v26  ;;  %v366_v23 = vsel %vm356_vm8, nan, %v365_v38  ;;  %v178_v26 = vadd.s32 8, %v1894_v2 }
 0x106   :  { %v815_v32 = vmul.f32 %v812_v28, %v1857_v61  ;;  %v675_v11 = vadd.f32 1.0, %v366_v23  ;;  %v521_v50 = vand.u32 2147483647, %v1841_v17  ;;  %v547_v43 = vshll.u32 %v1592_v58, %v535_v55 }
 0x107   :  { %v762_v9 = vpop.f32.mrf.mxu1  ;;  %v498_v42 = vmul.f32 %v497_v30, %v495_v8  ;;  %v505_v31 = vmul.f32 %v504_v20, %v495_v8  ;;  %vm205_vm3 = vcmp.ne.s32.totalorder %v178_v26, %v1643_v12  ;;  %v541_v18 = vshll.u32 %v1590_v54, %v535_v55 }
 0x108   :  { %v800_v36 = vadd.f32 %v799_v0, %v762_v9  ;;  %v818_v15 = vmul.f32 %v815_v32, %v1857_v61  ;;  %v809_v32 = vmul.f32 0.5, %v1857_v61  ;;  %v678_v14 = vmul.f32 0.5, %v675_v11  ;;  %vm208_vm6 = vmand %vm1686_vm4, %vm205_vm3 }
 0x109   :  { %v499_v47 = vadd.f32 -0.4999988, %v498_v42  ;;  %v506_v49 = vadd.f32 -0.16666654, %v505_v31  ;;  %v528_v38 = vand.u32 8388607, %v521_v50 }
 0x10a   :  { %v1878_v46 = vadd.f32 %v1848_v48, %v800_v36  ;;  %v821_v21 = vadd.f32 %v818_v15, %v1857_v61  ;;  %v681_v42 = vsel %vm207_vm5, %v678_v14, 0.0 }
 0x10b   :  { %v500_v57 = vmul.f32 %v499_v47, %v495_v8  ;;  %v507_v59 = vmul.f32 %v506_v49, %v495_v8 }
 0x10c   :  { %v824_v34 = vmul.f32 0.7978846, %v821_v21  ;;  %v813_v37 = vmul.f32 0.044715, %v1878_v46  ;;  %v1909_v21 = vsub.s32 32, %v535_v55  ;;  %v810_v27 = vmul.f32 0.5, %v1878_v46 }
 0x10d   :  { %v501_v0 = vadd.f32 1.0, %v500_v57  ;;  %v508_v28 = vadd.f32 1.0, %v507_v59 }
 0x10e   :  { %1513 = vtanh.f32 %v824_v34  ;;  %v816_v44 = vmul.f32 %v813_v37, %v1878_v46  ;;  %v548_v31 = vshrl.u32 %v1593_v60, %v1909_v21  ;;  %v551_v47 = vshrl.u32 %v1594_v5, %v1909_v21 }
 0x10f   :  { %v765_v35 = vpop.f32.mrf.mxu1  ;;  %v517_v6 = vxor.u32 2147483648, %v501_v0  ;;  %v539_v49 = vshrl.u32 %v1590_v54, %v1909_v21  ;;  %v544_v60 = vshll.u32 %v1591_v56, %v535_v55  ;;  %v545_v5 = vshrl.u32 %v1592_v58, %v1909_v21 }
 0x110   :  { %v803_v13 = vadd.f32 %v802_v39, %v765_v35  ;;  %v819_v53 = vmul.f32 %v816_v44, %v1878_v46  ;;  %v1923_v44 = vshrl.u32 %v533_v45, 5  ;;  %v538_v35 = vshll.u32 %v1589_v52, %v535_v55 }
 0x111   :  { %v542_v45 = vshrl.u32 %v1591_v56, %v1909_v21  ;;  %v552_v57 = vor.u32 %v551_v47, %v550_v25  ;;  %v546_v23 = vor.u32 %v545_v5, %v544_v60  ;;  %v529_v58 = vor.u32 8388608, %v528_v38 }
 0x112   :  { %v1890_v63 = vadd.f32 %v1848_v48, %v803_v13  ;;  %v822_v40 = vadd.f32 %v819_v53, %v1878_v46  ;;  %v509_v48 = vmul.f32 %v508_v28, %v493_v33  ;;  %v549_v13 = vor.u32 %v548_v31, %v547_v43 }
 0x113   :  { %vm556_vm2 = vcmp.lt.s32.totalorder %v1923_v44, 4  ;;  %v540_v54 = vor.u32 %v539_v49, %v538_v35  ;;  %vm553_vm4 = vcmp.lt.s32.totalorder %v1923_v44, 1  ;;  %vm555_vm7 = vcmp.lt.s32.totalorder %v1923_v44, 3 }
 0x114   :  { %v1514_v1 = vpop.eup %1513  ;;  %v825_v3 = vmul.f32 0.7978846, %v822_v40  ;;  %v814_v4 = vmul.f32 0.044715, %v1890_v63  ;;  %v514_v36 = vxor.u32 2147483648, %v509_v48  ;;  %v518_v15 = vsel %vm516_vm9, %v517_v6, %v509_v48 }
 0x115   :  { %v830_v8 = vadd.f32 1.0, %v1514_v1  ;;  %v811_v59 = vmul.f32 0.5, %v1890_v63  ;;  %v562_v56 = vsel %vm556_vm2, %v549_v13, 920167782  ;;  %v566_v55 = vsel %vm556_vm2, %v552_v57, 1326507024 }
 0x116   :  { %1515 = vtanh.f32 %v825_v3  ;;  %v817_v9 = vmul.f32 %v814_v4, %v1890_v63  ;;  %v515_v61 = vsel %vm513_vm12, %v501_v0, %v514_v36  ;;  %v543_v0 = vor.u32 %v542_v45, %v541_v18 }
 0x117   :  { %v1899_v10 = vmul.f32 %v830_v8, %v809_v32  ;;  %v519_v62 = vsel %vm512_vm13, %v515_v61, %v518_v15  ;;  %vm554_vm8 = vcmp.lt.s32.totalorder %v1923_v44, 2  ;;  %v563_v1 = vsel %vm555_vm7, %v546_v23, %v562_v56 }
 0x118   :  { %v820_v22 = vmul.f32 %v817_v9, %v1890_v63  ;;  %v520_v16 = vsel %vm510_vm14, nan, %v519_v62  ;;  %v565_v3 = vsel %vm553_vm4, %v543_v0, %v546_v23  ;;  %v567_v4 = vsel %vm555_vm7, %v549_v13, %v566_v55 }
 0x119   :  { %1455 = vmatmul.msk.f32.vlgmr.msra.gmra.mxu3 %vm837_vm10, %v1899_v10  ;;  %v676_v34 = vadd.f32 1.0, %v520_v16  ;;  %v569_v6 = vshll.u32 %v529_v58, 8  ;;  %v568_v8 = vsel %vm554_vm8, %v565_v3, %v567_v4  ;;  %v537_v38 = vshrl.u32 %v1589_v52, %v1909_v21 }
 0x11a   :  { %v823_v33 = vadd.f32 %v820_v22, %v1890_v63  ;;  %v561_v63 = vsel %vm553_vm4, %v540_v54, %v543_v0  ;;  %v573_v11 = vshrl.u32 %v568_v8, 16  ;;  %v572_v26 = vand.u32 65535, %v568_v8 }
 0x11b   :  { %v679_v41 = vmul.f32 0.5, %v676_v34  ;;  %v564_v32 = vsel %vm554_vm8, %v561_v63, %v563_v1  ;;  %v570_v48 = vand.u32 65535, %v569_v6  ;;  %v571_v36 = vshrl.u32 %v569_v6, 16 }
 0x11c   :  { %v1516_v30 = vpop.eup %1515  ;;  %v826_v20 = vmul.f32 0.7978846, %v823_v33  ;;  %v595_v9 = vshrl.u32 %v564_v32, 16  ;;  %v594_v15 = vand.u32 65535, %v564_v32  ;;  %v557_v58 = vsel %vm553_vm4, %v537_v38, %v540_v54 }
 0x11d   :  { %v831_v37 = vadd.f32 1.0, %v1516_v30  ;;  %v682_v46 = vsel %vm208_vm6, %v679_v41, 0.0  ;;  %v575_v61 = vmul.u32 %v573_v11, %v570_v48  ;;  %v574_v16 = vmul.u32 %v572_v26, %v570_v48 }
 0x11e   :  { %1517 = vtanh.f32 %v826_v20  ;;  %v1930_v29 = vpack.c.bf16 %v682_v46, %v681_v42  ;;  %v597_v22 = vmul.u32 %v595_v9, %v570_v48  ;;  %v596_v33 = vmul.u32 %v594_v15, %v570_v48 }
 0x11f   :  { %v1915_v39 = vmul.f32 %v831_v37, %v810_v27  ;;  %v598_v62 = vmul.u32 %v594_v15, %v571_v36  ;;  %v576_v30 = vmul.u32 %v572_v26, %v571_v36  ;;  %v578_v20 = vshll.u32 %v575_v61, 16 }
 0x120   :  { %v600_v14 = vshll.u32 %v597_v22, 16  ;;  %v599_v42 = vmul.u32 %v595_v9, %v571_v36  ;;  %v577_v43 = vmul.u32 %v573_v11, %v571_v36  ;;  %v601_v18 = vshrl.u32 %v597_v22, 16 }
 0x121   :  { %1456 = vmatmul.msk.f32.gmra.mxu3 %vm837_vm10, %v1915_v39  ;;  %v602_v34 = vshll.u32 %v598_v62, 16  ;;  %v580_v37 = vshll.u32 %v576_v30, 16  ;;  %vm582_vm12 = vc.u32 %v574_v16, %v578_v20  ;;  %v584_v41 = vadd.s32 %v578_v20, %v574_v16 }
 0x122   :  { %vm604_vm9 = vc.u32 %v596_v33, %v600_v14  ;;  %v606_v27 = vadd.s32 %v600_v14, %v596_v33  ;;  %v583_v46 = vsel %vm582_vm12, 1, %v1595_v19  ;;  %v579_v60 = vshrl.u32 %v575_v61, 16 }
 0x123   :  { %v605_v31 = vsel %vm604_vm9, 1, %v1595_v19  ;;  %vm586_vm14 = vc.u32 %v584_v41, %v580_v37  ;;  %v585_v47 = vadd.s32 %v583_v46, %v577_v43  ;;  %v603_v13 = vshrl.u32 %v598_v62, 16 }
 0x124   :  { %v1518_v53 = vpop.eup %1517  ;;  %vm608_vm13 = vc.u32 %v606_v27, %v602_v34  ;;  %v607_v25 = vadd.s32 %v605_v31, %v599_v42  ;;  %v587_v49 = vsel %vm586_vm14, 1, %v1595_v19  ;;  %v581_v57 = vshrl.u32 %v576_v30, 16 }
 0x125   :  { %v832_v40 = vadd.f32 1.0, %v1518_v53  ;;  %v609_v35 = vsel %vm608_vm13, 1, %v1595_v19  ;;  %v589_v5 = vadd.s32 %v587_v49, %v585_v47  ;;  %v610_v63 = vadd.s32 %v606_v27, %v602_v34  ;;  %v31_v27 = vld [vmem:[%s2199_s3 + $0x38] sm:$0xff] }
 0x126   :  { %v611_v45 = vadd.s32 %v609_v35, %v607_v25  ;;  %vm523_vm6 = vcmp.lt.s32.totalorder %v1841_v17, 0  ;;  %v836_v41 = vperm.slane %v31_v27, 0  ;;  %vm909_vm4 = vcmask 1043456  }
 0x127   :  { %v1945_v28 = vmul.f32 %v832_v40, %v811_v59  ;;  %v590_v59 = vadd.s32 %v589_v5, %v579_v60  ;;  %v558_v40 = vsel %vm556_vm2, %v546_v23, 2102212464  ;;  %vm1991_vm2 = vcmp.le.f32.partialorder %v521_v50, 0.7853982 }
 0x128   :  { %v612_v53 = vadd.s32 %v611_v45, %v601_v18  ;;  %v559_v19 = vsel %vm555_vm7, %v543_v0, %v558_v40  ;;  %vm902_vm12 = vcmask 195584   ;;  %vm664_vm13 = vweird.f32 %v1841_v17 }
 0x129   :  { %1457 = vmatmul.msk.f32.gmra.mxu3 %vm837_vm10, %v1945_v28  ;;  %v591_v55 = vadd.s32 %v590_v59, %v581_v57  ;;  %v560_v1 = vsel %vm554_vm8, %v557_v58, %v559_v19 }
 0x12a   :  { %v613_v56 = vadd.s32 %v612_v53, %v603_v13  ;;  %v614_v52 = vmul.u32 %v569_v6, %v560_v1 }
 0x12b   :  { %vm616_vm15 = vc.u32 %v591_v55, %v610_v63  ;;  %v615_v15 = vadd.s32 %v610_v63, %v591_v55 }
 0x12c   :  { %v617_v3 = vadd.s32 1, %v613_v56 }
 0x12e   :  { %v618_v21 = vsel %vm616_vm15, %v617_v3, %v613_v56 }
 0x12f   :  { %v619_v4 = vadd.s32 %v618_v21, %v614_v52 }
 0x131   :  { %v620_v32 = vadd.s32 536870912, %v619_v4 }
 0x133   :  { %v1982_v8 = vshrl.u32 %v620_v32, 30 }
 0x135   :  { %v622_v23 = vshll.u32 %v1982_v8, 30 }
 0x137   :  { %v623_v48 = vsub.s32 %v619_v4, %v622_v23 }
 0x139   :  { %v625_v54 = vsub.s32 0, %v623_v48  ;;  %vm624_vm3 = vcmp.lt.s32.totalorder %v623_v48, 0 }
 0x13b   :  { %v626_v9 = vsel %vm624_vm3, %v625_v54, %v623_v48 }
 0x13c   :  { %v627_v0 = vclz %v626_v9 }
 0x13e   :  { %v1439_v11 = vadd.s32 4294967294, %v627_v0 }
 0x140   :  { %vm1440_vm5 = vcmp.lt.s32.totalorder %v1439_v11, 0 }
 0x141   :  { %v630_v36 = vsel %vm1440_vm5, 0, %v1439_v11 }
 0x142   :  { %v635_v44 = vsub.s32 4294967266, %v630_v36  ;;  %v631_v22 = vsub.s32 32, %v630_v36  ;;  %v632_v6 = vshll.u32 %v623_v48, %v630_v36  ;;  %v645_v48 = vsub.s32 4, %v1982_v8 }
 0x144   :  { %v636_v26 = vadd.s32 127, %v635_v44  ;;  %v633_v61 = vshrl.u32 %v615_v15, %v631_v22  ;;  %v646_v0 = vsel %vm523_vm6, %v645_v48, %v1982_v8  ;;  %v35_v22 = vld [vmem:[%s2199_s3 + $0x58] sm:$0xff] }
 0x145   :  { %v648_v15 = vsel %vm1991_vm2, 0, %v646_v0  ;;  %953 = vmatpush.msrb.mxu1 %v35_v22 }
 0x146   :  { %v637_v33 = vshll.u32 %v636_v26, 23  ;;  %v634_v62 = vor.u32 %v633_v61, %v632_v6  ;;  %v34_v26 = vld [vmem:[%s2199_s3 + $0x50] sm:$0xff] }
 0x147   :  { %954 = vmatpush.msrb.mxu1 %v34_v26 }
 0x148   :  { %v638_v14 = vor.u32 4788187, %v637_v33  ;;  %v641_v30 = vcvt.s32.f32 %v634_v62 }
 0x14a   :  { %v639_v16 = vand.u32 2147483647, %v638_v14 }
 0x14c   :  { %v642_v20 = vmul.f32 %v641_v30, %v639_v16  ;;  %v33_v16 = vld [vmem:[%s2199_s3 + $0x48] sm:$0xff] }
 0x14d   :  { %955 = vmatpush.msrb.mxu1 %v33_v16 }
 0x14e   :  { %v643_v34 = vxor.u32 2147483648, %v642_v20 }
 0x150   :  { %v644_v43 = vsel %vm523_vm6, %v643_v34, %v642_v20  ;;  %v665_v20 = vand.u32 3, %v648_v15  ;;  %vm1414_vm6 = vcmask 58368  }
 0x151   :  { %v647_v31 = vsel %vm1991_vm2, %v1841_v17, %v644_v43  ;;  %v32_v17 = vld [vmem:[%s2199_s3 + $0x40] sm:$0xff] }
 0x152   :  { %v649_v47 = vmul.f32 %v647_v31, %v647_v31  ;;  %vm667_vm7 = vcmp.eq.s32.totalorder %v665_v20, 0  ;;  %vm670_vm8 = vcmp.eq.s32.totalorder %v665_v20, 2  ;;  %vm666_vm9 = vcmp.lt.s32.totalorder %v665_v20, 2  ;;  %956 = vmatpush.msrb.mxu1 %v32_v17 }
 0x154   :  { %v657_v45 = vmul.f32 -0.00019511016, %v649_v47  ;;  %v650_v53 = vmul.f32 -0.001358992, %v649_v47 }
 0x156   :  { %v658_v38 = vadd.f32 0.008332121, %v657_v45  ;;  %v651_v58 = vadd.f32 0.041655596, %v650_v53 }
 0x158   :  { %v659_v19 = vmul.f32 %v658_v38, %v649_v47  ;;  %v652_v52 = vmul.f32 %v651_v58, %v649_v47  ;;  %v38_v58 = vld [vmem:[%s2199_s3 + $0x70] sm:$0xff] }
 0x15a   :  { %v660_v21 = vadd.f32 -0.16666654, %v659_v19  ;;  %v653_v54 = vadd.f32 -0.4999988, %v652_v52  ;;  %v37_v19 = vld [vmem:[%s2199_s3 + $0x68] sm:$0xff] }
 0x15c   :  { %v661_v9 = vmul.f32 %v660_v21, %v649_v47  ;;  %v654_v11 = vmul.f32 %v653_v54, %v649_v47 }
 0x15e   :  { %v662_v36 = vadd.f32 1.0, %v661_v9  ;;  %v655_v8 = vadd.f32 1.0, %v654_v11 }
 0x160   :  { %v663_v14 = vmul.f32 %v662_v36, %v647_v31  ;;  %v671_v43 = vxor.u32 2147483648, %v655_v8 }
 0x162   :  { %v668_v42 = vxor.u32 2147483648, %v663_v14  ;;  %v672_v45 = vsel %vm670_vm8, %v671_v43, %v663_v14 }
 0x19c   :  { %v864_v37 = vpop.f32.mrf.mxu3 }
 0x19d   :  { %v865_v46 = vadd.f32 %v864_v37, %v836_v41 }
 0x19f   :  { %v876_v49 = vmul.f32 0.044715, %v865_v46 }
 0x1a1   :  { %v879_v5 = vmul.f32 %v876_v49, %v865_v46 }
 0x1a3   :  { %v882_v59 = vmul.f32 %v879_v5, %v865_v46  ;;  %v179_v5 = vadd.s32 16, %v1894_v2 }
 0x1a4   :  { %v867_v25 = vpop.f32.mrf.mxu3 }
 0x1a5   :  { %v868_v35 = vadd.f32 %v867_v25, %v836_v41  ;;  %v885_v63 = vadd.f32 %v882_v59, %v865_v46  ;;  %v873_v25 = vmul.f32 0.5, %v865_v46  ;;  %vm206_vm14 = vcmp.ne.s32.totalorder %v179_v5, %v1643_v12 }
 0x1a6   :  { %vm209_vm15 = vmand %vm1703_vm11, %vm206_vm14 }
 0x1a7   :  { %v877_v18 = vmul.f32 0.044715, %v868_v35  ;;  %v888_v32 = vmul.f32 0.7978846, %v885_v63  ;;  %v874_v27 = vmul.f32 0.5, %v868_v35 }
 0x1a9   :  { %v880_v60 = vmul.f32 %v877_v18, %v868_v35  ;;  %v669_v18 = vsel %vm667_vm7, %v655_v8, %v668_v42 }
 0x1ab   :  { %v883_v13 = vmul.f32 %v880_v60, %v868_v35 }
 0x1ac   :  { %v870_v50 = vpop.f32.mrf.mxu3 }
 0x1ad   :  { %v871_v57 = vadd.f32 %v870_v50, %v836_v41  ;;  %v886_v56 = vadd.f32 %v883_v13, %v868_v35  ;;  %v673_v35 = vsel %vm666_vm9, %v669_v18, %v672_v45 }
 0x1ae   :  { %v674_v46 = vsel %vm664_vm13, nan, %v673_v35 }
 0x1af   :  { %v878_v40 = vmul.f32 0.044715, %v871_v57  ;;  %v889_v3 = vmul.f32 0.7978846, %v886_v56  ;;  %v875_v33 = vmul.f32 0.5, %v871_v57  ;;  %v677_v50 = vadd.f32 1.0, %v674_v46 }
 0x1b0   :  { %v39_v56 = vld [vmem:[%s2199_s3 + $0x78] sm:$0xff] }
 0x1b1   :  { %v881_v55 = vmul.f32 %v878_v40, %v871_v57  ;;  %1519 = vtanh.f32 %v889_v3  ;;  %v680_v13 = vmul.f32 0.5, %v677_v50  ;;  %v40_v40 = vld [vmem:[%s2199_s3 + $0x80] sm:$0xff] }
 0x1b2   :  { %1019 = vmatpush.msrb.mxu2 %v40_v40 }
 0x1b3   :  { %v884_v1 = vmul.f32 %v881_v55, %v871_v57  ;;  %v683_v53 = vsel %vm209_vm15, %v680_v13, 0.0  ;;  %v36_v55 = vld [vmem:[%s2199_s3 + $0x60] sm:$0xff] }
 0x1b4   :  { %v2023_v38 = vpack.c.bf16 %v683_v53, %v683_v53  ;;  %1020 = vmatpush.msrb.mxu2 %v39_v56  ;;  %v931_v63 = vperm.slane %v36_v55, 0 }
 0x1b5   :  { %v887_v4 = vadd.f32 %v884_v1, %v871_v57 }
 0x1b6   :  { %1021 = vmatpush.msrb.mxu2 %v38_v58 }
 0x1b7   :  { %v890_v23 = vmul.f32 0.7978846, %v887_v4  ;;  %v1520_v44 = vpop.eup %1519 }
 0x1b8   :  { %v895_v30 = vadd.f32 1.0, %v1520_v44  ;;  %1022 = vmatpush.msrb.mxu2 %v37_v19 }
 0x1b9   :  { %1521 = vtanh.f32 %v890_v23 }
 0x1ba   :  { %1523 = vtanh.f32 %v888_v32  ;;  %v898_v47 = vmul.f32 %v895_v30, %v874_v27 }
 0x1bf   :  { %v1522_v6 = vpop.eup %1521 }
 0x1c0   :  { %v1524_v61 = vpop.eup %1523  ;;  %v896_v62 = vadd.f32 1.0, %v1522_v6 }
 0x1c1   :  { %v894_v37 = vadd.f32 1.0, %v1524_v61 }
 0x1c2   :  { %v899_v34 = vmul.f32 %v896_v62, %v875_v33 }
 0x1c3   :  { %v897_v49 = vmul.f32 %v894_v37, %v873_v25 }
 0x1c4   :  { %v901_v41 = vpack.c.bf16 %v899_v34, %v899_v34 }
 0x1c5   :  { %v900_v60 = vpack.c.bf16 %v898_v47, %v897_v49  ;;  %v41_v49 = vld [vmem:[%s2199_s3 + $0x88] sm:$0xff] }
 0x1c6   :  { %v911_v31 = vsel %vm909_vm4, %v901_v41, 0 }
 0x1c7   :  { %919 = vmatpush.bf16.msrb.mxu0 %v911_v31 }
 0x1cb   :  { %920 = vmatpush.bf16.msrb.mxu0 %v900_v60 }
 0x1ce   :  { %1458 = vmatmul.msk.bf16.vlgmr.msrb.gmra.mxu0 %vm902_vm12, %v1930_v29 }
 0x1de   :  { %1459 = vmatmul.msk.bf16.gmra.mxu0 %vm902_vm12, %v2023_v38 }
 0x24b   :  { %v922_v57 = vpop.f32.mrf.mxu0 }
 0x24c   :  { %1460 = vmatmul.msk.f32.vlgmr.msrb.gmra.mxu1 %vm837_vm10, %v922_v57 }
 0x253   :  { %v924_v59 = vpop.f32.mrf.mxu0 }
 0x254   :  { %1461 = vmatmul.msk.f32.gmra.mxu1 %vm837_vm10, %v924_v59 }
 0x25b   :  { %v927_v12 = vpop.f32.mrf.mxu0 }
 0x25c   :  { %1462 = vmatmul.msk.f32.gmra.mxu1 %vm837_vm10, %v927_v12 }
 0x263   :  { %v929_v51 = vpop.f32.mrf.mxu0 }
 0x2c9   :  { %v958_v1 = vpop.f32.mrf.mxu1 }
 0x2ca   :  { %v959_v3 = vadd.f32 %v958_v1, %v931_v63 }
 0x2cc   :  { %v970_v52 = vmul.f32 0.044715, %v959_v3  ;;  %v967_v61 = vmul.f32 0.5, %v959_v3 }
 0x2ce   :  { %v973_v21 = vmul.f32 %v970_v52, %v959_v3  ;;  %v44_v52 = vld [vmem:[%s2199_s3 + $0xa0] sm:$0xff] }
 0x2d0   :  { %v976_v4 = vmul.f32 %v973_v21, %v959_v3 }
 0x2d1   :  { %v961_v32 = vpop.f32.mrf.mxu1 }
 0x2d2   :  { %v979_v23 = vadd.f32 %v976_v4, %v959_v3  ;;  %v962_v48 = vadd.f32 %v961_v32, %v931_v63  ;;  %v45_v3 = vld [vmem:[%s2199_s3 + $0xa8] sm:$0xff] }
 0x2d3   :  { %1105 = vmatpush.msra.mxu0 %v45_v3 }
 0x2d4   :  { %v982_v54 = vmul.f32 0.7978846, %v979_v23  ;;  %v971_v9 = vmul.f32 0.044715, %v962_v48  ;;  %v968_v27 = vmul.f32 0.5, %v962_v48 }
 0x2d5   :  { %1106 = vmatpush.msra.mxu0 %v44_v52 }
 0x2d6   :  { %v974_v0 = vmul.f32 %v971_v9, %v962_v48  ;;  %1525 = vtanh.f32 %v982_v54 }
 0x2d8   :  { %v977_v11 = vmul.f32 %v974_v0, %v962_v48 }
 0x2d9   :  { %v964_v36 = vpop.f32.mrf.mxu1 }
 0x2da   :  { %v965_v44 = vadd.f32 %v964_v36, %v931_v63  ;;  %v980_v15 = vadd.f32 %v977_v11, %v962_v48  ;;  %v43_v48 = vld [vmem:[%s2199_s3 + $0x98] sm:$0xff] }
 0x2db   :  { %1107 = vmatpush.msra.mxu0 %v43_v48  ;;  %v51_v48 = vld [vmem:[%s2199_s3 + $0xd8] sm:$0xff] }
 0x2dc   :  { %v1526_v22 = vpop.eup %1525  ;;  %v972_v26 = vmul.f32 0.044715, %v965_v44  ;;  %v983_v6 = vmul.f32 0.7978846, %v980_v15  ;;  %v969_v25 = vmul.f32 0.5, %v965_v44 }
 0x2dd   :  { %v988_v33 = vadd.f32 1.0, %v1526_v22 }
 0x2de   :  { %v975_v62 = vmul.f32 %v972_v26, %v965_v44  ;;  %1527 = vtanh.f32 %v983_v6 }
 0x2df   :  { %v991_v8 = vmul.f32 %v988_v33, %v967_v61  ;;  %v42_v61 = vld [vmem:[%s2199_s3 + $0x90] sm:$0xff] }
 0x2e0   :  { %v978_v14 = vmul.f32 %v975_v62, %v965_v44  ;;  %1108 = vmatpush.msra.mxu0 %v42_v61 }
 0x2e1   :  { %v2049_v16 = vadd.f32 %v991_v8, %v1899_v10 }
 0x2e2   :  { %v981_v30 = vadd.f32 %v978_v14, %v965_v44 }
 0x2e3   :  { %1463 = vmatmul.msk.f32.vlgmr.msrb.gmra.mxu2 %vm837_vm10, %v2049_v16 }
 0x2e4   :  { %v1528_v20 = vpop.eup %1527  ;;  %v984_v34 = vmul.f32 0.7978846, %v981_v30  ;;  %v48_v30 = vld [vmem:[%s2199_s3 + $0xc0] sm:$0xff] }
 0x2e5   :  { %v989_v37 = vadd.f32 1.0, %v1528_v20  ;;  %v47_v20 = vld [vmem:[%s2199_s3 + $0xb8] sm:$0xff] }
 0x2e6   :  { %1529 = vtanh.f32 %v984_v34  ;;  %v46_v34 = vld [vmem:[%s2199_s3 + $0xb0] sm:$0xff] }
 0x2e7   :  { %v992_v41 = vmul.f32 %v989_v37, %v968_v27  ;;  %v1083_v27 = vperm.slane %v46_v34, 0  ;;  %v54_v34 = vld [vmem:[%s2199_s3 + $0xf0] sm:$0xff] }
 0x2e9   :  { %v2054_v42 = vadd.f32 %v992_v41, %v1915_v39  ;;  %v997_v39 = vperm.slane %v41_v49, 0 }
 0x2eb   :  { %1464 = vmatmul.msk.f32.gmra.mxu2 %vm837_vm10, %v2054_v42 }
 0x2ec   :  { %v1530_v43 = vpop.eup %1529 }
 0x2ed   :  { %v990_v10 = vadd.f32 1.0, %v1530_v43 }
 0x2ef   :  { %v993_v47 = vmul.f32 %v990_v10, %v969_v25 }
 0x2f1   :  { %v2059_v31 = vadd.f32 %v993_v47, %v1945_v28 }
 0x2f3   :  { %1465 = vmatmul.msk.f32.gmra.mxu2 %vm837_vm10, %v2059_v31 }
 0x366   :  { %v1024_v18 = vpop.f32.mrf.mxu2 }
 0x367   :  { %v1025_v45 = vadd.f32 %v1024_v18, %v997_v39 }
 0x369   :  { %v1036_v46 = vmul.f32 0.044715, %v1025_v45  ;;  %v1033_v44 = vmul.f32 0.5, %v1025_v45 }
 0x36b   :  { %v1039_v13 = vmul.f32 %v1036_v46, %v1025_v45 }
 0x36d   :  { %v1042_v57 = vmul.f32 %v1039_v13, %v1025_v45 }
 0x36e   :  { %v1027_v60 = vpop.f32.mrf.mxu2 }
 0x36f   :  { %v1028_v35 = vadd.f32 %v1027_v60, %v997_v39  ;;  %v1045_v40 = vadd.f32 %v1042_v57, %v1025_v45 }
 0x371   :  { %v1037_v5 = vmul.f32 0.044715, %v1028_v35  ;;  %v1048_v55 = vmul.f32 0.7978846, %v1045_v40  ;;  %v1034_v0 = vmul.f32 0.5, %v1028_v35 }
 0x373   :  { %v1040_v50 = vmul.f32 %v1037_v5, %v1028_v35 }
 0x375   :  { %v1043_v17 = vmul.f32 %v1040_v50, %v1028_v35 }
 0x376   :  { %v1030_v53 = vpop.f32.mrf.mxu2 }
 0x377   :  { %v1031_v28 = vadd.f32 %v1030_v53, %v997_v39  ;;  %v1046_v12 = vadd.f32 %v1043_v17, %v1028_v35 }
 0x379   :  { %v1038_v59 = vmul.f32 0.044715, %v1031_v28  ;;  %v1049_v58 = vmul.f32 0.7978846, %v1046_v12  ;;  %v1035_v32 = vmul.f32 0.5, %v1031_v28 }
 0x37b   :  { %v1041_v51 = vmul.f32 %v1038_v59, %v1031_v28  ;;  %1531 = vtanh.f32 %v1049_v58 }
 0x37d   :  { %v1044_v56 = vmul.f32 %v1041_v51, %v1031_v28 }
 0x37f   :  { %v1047_v19 = vadd.f32 %v1044_v56, %v1031_v28 }
 0x381   :  { %v1050_v63 = vmul.f32 0.7978846, %v1047_v19  ;;  %v1532_v1 = vpop.eup %1531 }
 0x382   :  { %v1055_v54 = vadd.f32 1.0, %v1532_v1 }
 0x383   :  { %1533 = vtanh.f32 %v1050_v63 }
 0x384   :  { %1535 = vtanh.f32 %v1048_v55  ;;  %v1058_v15 = vmul.f32 %v1055_v54, %v1034_v0  ;;  %v1149_v54 = vperm.slane %v51_v48, 0 }
 0x389   :  { %v1534_v21 = vpop.eup %1533 }
 0x38a   :  { %v1536_v4 = vpop.eup %1535  ;;  %v1056_v23 = vadd.f32 1.0, %v1534_v21 }
 0x38b   :  { %v1054_v11 = vadd.f32 1.0, %v1536_v4 }
 0x38c   :  { %v1059_v9 = vmul.f32 %v1056_v23, %v1035_v32 }
 0x38d   :  { %v1057_v26 = vmul.f32 %v1054_v11, %v1033_v44 }
 0x38e   :  { %v1061_v36 = vpack.c.bf16 %v1059_v9, %v1059_v9 }
 0x38f   :  { %v1060_v6 = vpack.c.bf16 %v1058_v15, %v1057_v26 }
 0x390   :  { %v1063_v22 = vsel %vm909_vm4, %v1061_v36, 0 }
 0x391   :  { %1071 = vmatpush.bf16.msrb.mxu3 %v1063_v22 }
 0x395   :  { %1072 = vmatpush.bf16.msrb.mxu3 %v1060_v6 }
 0x398   :  { %1466 = vmatmul.msk.bf16.vlgmr.msrb.gmra.mxu3 %vm902_vm12, %v1930_v29  ;;  %v50_v29 = vld [vmem:[%s2199_s3 + $0xd0] sm:$0xff] }
 0x399   :  { %1171 = vmatpush.msra.mxu1 %v50_v29  ;;  %1476 = vmatpush.msk.msra.mxu3 %vm704_vm0, %v54_v34 }
 0x3a8   :  { %1467 = vmatmul.msk.bf16.gmra.mxu3 %vm902_vm12, %v2023_v38  ;;  %v49_v38 = vld [vmem:[%s2199_s3 + $0xc8] sm:$0xff] }
 0x3a9   :  { %1172 = vmatpush.msra.mxu1 %v49_v38 }
 0x3ab   :  { %1173 = vmatpush.msra.mxu1 %v48_v30  ;;  %v53_v30 = vld [vmem:[%s2199_s3 + $0xe8] sm:$0xff] }
 0x3ad   :  { %1174 = vmatpush.msra.mxu1 %v47_v20 }
 0x41b   :  { %v1074_v33 = vpop.f32.mrf.mxu3 }
 0x41c   :  { %1468 = vmatmul.msk.f32.vlgmr.msra.gmra.mxu0 %vm837_vm10, %v1074_v33 }
 0x423   :  { %v1076_v62 = vpop.f32.mrf.mxu3 }
 0x424   :  { %1469 = vmatmul.msk.f32.gmra.mxu0 %vm837_vm10, %v1076_v62 }
 0x42b   :  { %v1079_v8 = vpop.f32.mrf.mxu3 }
 0x42c   :  { %1470 = vmatmul.msk.f32.gmra.mxu0 %vm837_vm10, %v1079_v8 }
 0x433   :  { %v1081_v14 = vpop.f32.mrf.mxu3 }
 0x499   :  { %v1110_v37 = vpop.f32.mrf.mxu0 }
 0x49a   :  { %v1111_v41 = vadd.f32 %v1110_v37, %v1083_v27 }
 0x49c   :  { %v1122_v43 = vmul.f32 0.044715, %v1111_v41  ;;  %v1119_v28 = vmul.f32 0.5, %v1111_v41 }
 0x49e   :  { %v1125_v25 = vmul.f32 %v1122_v43, %v1111_v41 }
 0x4a0   :  { %v1128_v10 = vmul.f32 %v1125_v25, %v1111_v41 }
 0x4a1   :  { %v1113_v47 = vpop.f32.mrf.mxu0 }
 0x4a2   :  { %v1131_v49 = vadd.f32 %v1128_v10, %v1111_v41  ;;  %v1114_v18 = vadd.f32 %v1113_v47, %v1083_v27  ;;  %v1557_v41 = vld [vmem:[%s2198_s2] sm:$0x3] }
 0x4a3   :  { %1477 = vmatmul.msk.f32.vlgmr.msra.gmra.mxu3 %vm700_vm1, %v1557_v41 }
 0x4a4   :  { %v1134_v39 = vmul.f32 0.7978846, %v1131_v49  ;;  %v1123_v45 = vmul.f32 0.044715, %v1114_v18  ;;  %v1120_v55 = vmul.f32 0.5, %v1114_v18 }
 0x4a6   :  { %1537 = vtanh.f32 %v1134_v39  ;;  %v1126_v60 = vmul.f32 %v1123_v45, %v1114_v18 }
 0x4a8   :  { %v1129_v35 = vmul.f32 %v1126_v60, %v1114_v18 }
 0x4a9   :  { %v1116_v46 = vpop.f32.mrf.mxu0 }
 0x4aa   :  { %v1117_v5 = vadd.f32 %v1116_v46, %v1083_v27  ;;  %v1132_v50 = vadd.f32 %v1129_v35, %v1114_v18  ;;  %v686_v46 = vcvt.s32.f32 %v1894_v2 }
 0x4ac   :  { %v1538_v13 = vpop.eup %1537  ;;  %v1124_v53 = vmul.f32 0.044715, %v1117_v5  ;;  %v1135_v17 = vmul.f32 0.7978846, %v1132_v50  ;;  %v1121_v21 = vmul.f32 0.5, %v1117_v5  ;;  %vm688_vm0 = vcmp.eq.f32.partialorder %v686_v46, %v1670_v7  ;;  %v59_v7 = vld [vmem:[%s2199_s3 + $0x118] sm:$0xff] }
 0x4ad   :  { %v1140_v57 = vadd.f32 1.0, %v1538_v13  ;;  %v1441_v13 = vsel %vm688_vm0, 1.0, %v1588_v24  ;;  %v58_v24 = vld [vmem:[%s2199_s3 + $0x110] sm:$0xff] }
 0x4ae   :  { %v1127_v59 = vmul.f32 %v1124_v53, %v1117_v5  ;;  %1539 = vtanh.f32 %v1135_v17 }
 0x4af   :  { %v1143_v12 = vmul.f32 %v1140_v57, %v1119_v28 }
 0x4b0   :  { %v1130_v51 = vmul.f32 %v1127_v59, %v1117_v5  ;;  %v57_v59 = vld [vmem:[%s2199_s3 + $0x108] sm:$0xff] }
 0x4b1   :  { %v1146_v40 = vadd.f32 %v1143_v12, %v2049_v16  ;;  %v63_v12 = vld [vmem:[%s2199_s3 + $0x138] sm:$0xff] }
 0x4b2   :  { %v1133_v56 = vadd.f32 %v1130_v51, %v1117_v5  ;;  %v56_v51 = vld [vmem:[%s2199_s3 + $0x100] sm:$0xff]  ;;  %1316 = vmatpush.msrb.mxu0 %v63_v12 }
 0x4b3   :  { %1471 = vmatmul.msk.f32.vlgmr.msra.gmra.mxu1 %vm837_vm10, %v1146_v40  ;;  %v62_v40 = vld [vmem:[%s2199_s3 + $0x130] sm:$0xff] }
 0x4b4   :  { %v1540_v58 = vpop.eup %1539  ;;  %v1136_v19 = vmul.f32 0.7978846, %v1133_v56  ;;  %v55_v56 = vld [vmem:[%s2199_s3 + $0xf8] sm:$0xff]  ;;  %1317 = vmatpush.msrb.mxu0 %v62_v40 }
 0x4b5   :  { %v1141_v63 = vadd.f32 1.0, %v1540_v58 }
 0x4b6   :  { %1541 = vtanh.f32 %v1136_v19  ;;  %v61_v19 = vld [vmem:[%s2199_s3 + $0x128] sm:$0xff] }
 0x4b7   :  { %v1144_v1 = vmul.f32 %v1141_v63, %v1120_v55  ;;  %v1277_v55 = vperm.slane %v55_v56, 0  ;;  %v60_v63 = vld [vmem:[%s2199_s3 + $0x120] sm:$0xff]  ;;  %1318 = vmatpush.msrb.mxu0 %v61_v19 }
 0x4b9   :  { %v1147_v3 = vadd.f32 %v1144_v1, %v2054_v42  ;;  %v52_v42 = vld [vmem:[%s2199_s3 + $0xe0] sm:$0xff]  ;;  %1319 = vmatpush.msrb.mxu0 %v60_v63 }
 0x4ba   :  { %v1186_v36 = vperm.slane %v52_v42, 0  ;;  %v1185_v27 = vmul.f32 %v53_v30, %v52_v42 }
 0x4bb   :  { %1472 = vmatmul.msk.f32.gmra.mxu1 %vm837_vm10, %v1147_v3 }
 0x4bc   :  { %v1542_v52 = vpop.eup %1541 }
 0x4bd   :  { %v1142_v4 = vadd.f32 1.0, %v1542_v52 }
 0x4bf   :  { %v1145_v32 = vmul.f32 %v1142_v4, %v1121_v21 }
 0x4c1   :  { %v1148_v23 = vadd.f32 %v1145_v32, %v2059_v31 }
 0x4c3   :  { %1473 = vmatmul.msk.f32.gmra.mxu1 %vm837_vm10, %v1148_v23 }
 0x526   :  { %v1298_v58 = vpop.f32.mrf.mxu3 }
 0x527   :  { %v1299_v1 = vadd.f32 %v1298_v58, %v1277_v55 }
 0x529   :  { %1478 = vmatmul.msk.f32.vlgmr.msrb.gmra.mxu0 %vm837_vm10, %v1299_v1 }
 0x530   :  { %v1176_v16 = vpop.f32.mrf.mxu1 }
 0x531   :  { %v1177_v11 = vadd.f32 %v1176_v16, %v1149_v54 }
 0x533   :  { %v1187_v15 = vmul.f32 %v1186_v36, %v1177_v11 }
 0x535   :  { %v1190_v6 = vsel %vm837_vm10, %v1187_v15, -inf }
 0x538   :  { %v1179_v9 = vpop.f32.mrf.mxu1 }
 0x539   :  { %v1180_v0 = vadd.f32 %v1179_v9, %v1149_v54 }
 0x53b   :  { %v1188_v44 = vmul.f32 %v1186_v36, %v1180_v0 }
 0x53d   :  { %v1191_v31 = vsel %vm837_vm10, %v1188_v44, -inf }
 0x53e   :  { %v1193_v33 = vmax.f32 %v1190_v6, %v1191_v31  ;;  %v67_v31 = vld [vmem:[%s2199_s3 + $0x158] sm:$0xff]  ;;  %v65_v6 = vld [vmem:[%s2199_s3 + $0x148] sm:$0xff] }
 0x540   :  { %v1182_v22 = vpop.f32.mrf.mxu1 }
 0x541   :  { %v1183_v26 = vadd.f32 %v1182_v22, %v1149_v54  ;;  %v68_v22 = vld [vmem:[%s2199_s3 + $0x160] sm:$0xff] }
 0x542   :  { %1374 = vmatpush.msrb.mxu3 %v68_v22 }
 0x543   :  { %v1189_v61 = vmul.f32 %v1186_v36, %v1183_v26 }
 0x544   :  { %1375 = vmatpush.msrb.mxu3 %v67_v31 }
 0x545   :  { %v1192_v62 = vsel %vm837_vm10, %v1189_v61, -inf }
 0x546   :  { %v1194_v8 = vmax.f32 %v1193_v33, %v1192_v62 }
 0x548   :  { %v1195_v14 = vrot.slane %v1194_v8, 4 }
 0x54a   :  { %v1196_v29 = vmax.f32 %v1194_v8, %v1195_v14 }
 0x54c   :  { %v1197_v38 = vrot.slane %v1196_v29, 2 }
 0x54e   :  { %v1198_v20 = vmax.f32 %v1196_v29, %v1197_v38 }
 0x550   :  { %v1199_v37 = vrot.slane %v1198_v20, 1 }
 0x552   :  { %v1200_v43 = vmax.f32 %v1198_v20, %v1199_v37 }
 0x554   :  { %v1201_v25 = vmax.f32 %v1200_v43, %v1185_v27 }
 0x556   :  { %v1202_v10 = vperm.slane %v1201_v25, 0  ;;  %v1212_v47 = vsub.f32 %v1185_v27, %v1201_v25 }
 0x558   :  { %v1204_v49 = vsub.f32 %v1188_v44, %v1202_v10  ;;  %v1205_v18 = vsub.f32 %v1189_v61, %v1202_v10  ;;  %v1203_v39 = vsub.f32 %v1187_v15, %v1202_v10  ;;  %v1213_v2 = vmul.f32 1.442695, %v1212_v47  ;;  %v64_v61 = vld [vmem:[%s2199_s3 + $0x140] sm:$0xff]  ;;  %v73_v10 = vld [vmem:[%s2199_s3 + $0x188] sm:$0xff] }
 0x559   :  { %v1347_v62 = vperm.slane %v64_v61, 0  ;;  %v72_v47 = vld [vmem:[%s2199_s3 + $0x180] sm:$0xff]  ;;  %1406 = vmatpush.msra.mxu0 %v73_v10 }
 0x55a   :  { %v1210_v45 = vmul.f32 1.442695, %v1205_v18  ;;  %v1208_v60 = vmul.f32 1.442695, %v1204_v49  ;;  %v1206_v35 = vmul.f32 1.442695, %v1203_v39 }
 0x55b   :  { %v71_v49 = vld [vmem:[%s2199_s3 + $0x178] sm:$0xff]  ;;  %1407 = vmatpush.msra.mxu0 %v72_v47  ;;  %v70_v18 = vld [vmem:[%s2199_s3 + $0x170] sm:$0xff]  ;;  %v69_v39 = vld [vmem:[%s2199_s3 + $0x168] sm:$0xff] }
 0x55c   :  { %1543 = vpow2.f32 %v1210_v45  ;;  %v1358_v45 = vperm.slane %v69_v39, 0 }
 0x55d   :  { %1545 = vpow2.f32 %v1208_v60  ;;  %1408 = vmatpush.msra.mxu0 %v71_v49 }
 0x55e   :  { %1547 = vpow2.f32 %v1206_v35 }
 0x55f   :  { %1549 = vpow2.f32 %v1213_v2  ;;  %1409 = vmatpush.msra.mxu0 %v70_v18 }
 0x562   :  { %v1544_v5 = vpop.eup %1543 }
 0x563   :  { %1232 = vmatpush.msra.mxu2 %v1544_v5  ;;  %v1546_v50 = vpop.eup %1545  ;;  %v1241_v17 = vmul.f32 %v1544_v5, %v1183_v26  ;;  %v66_v26 = vld [vmem:[%s2199_s3 + $0x150] sm:$0xff]  ;;  %s1423_s3 = sshll.u32 %s2200_s4, 4  ;;  %s1424_s3 = int_to_ptr.hbm [resolvable:$true] %s1423_s3 }
 0x564   :  { %v1548_v53 = vpop.eup %1547  ;;  %v1240_v28 = vmul.f32 %v1546_v50, %v1180_v0  ;;  %1376 = vmatpush.msrb.mxu3 %v66_v26 }
 0x565   :  { %1233 = vmatpush.msra.mxu2 %v1546_v50  ;;  %v1239_v57 = vmul.f32 %v1548_v53, %v1177_v11  ;;  %v1550_v3 = vpop.eup %1549 }
 0x566   :  { %v1215_v52 = vperm.slane %v1550_v3, 0  ;;  %1377 = vmatpush.msrb.mxu3 %v65_v6 }
 0x567   :  { %1234 = vmatpush.msra.mxu2 %v1548_v53 }
 0x568   :  { %1474 = vmatmul.msk.f32.vlgmr.msra.gmra.mxu2 %vm902_vm12, %v1441_v13 }
 0x569   :  { %1255 = vmatpush.msrb.mxu2 %v1241_v17 }
 0x56b   :  { %1256 = vmatpush.msrb.mxu2 %v1240_v28 }
 0x56d   :  { %1257 = vmatpush.msrb.mxu2 %v1239_v57 }
 0x56f   :  { %1339 = vmatpush.msra.mxu2 %v59_v7 }
 0x570   :  { %1475 = vmatmul.msk.f32.vlgmr.msrb.gmra.mxu2 %vm902_vm12, %v1441_v13 }
 0x571   :  { %1340 = vmatpush.msra.mxu2 %v58_v24 }
 0x573   :  { %1341 = vmatpush.msra.mxu2 %v57_v59 }
 0x575   :  { %1342 = vmatpush.msra.mxu2 %v56_v51 }
 0x5a6   :  { %v1321_v33 = vpop.f32.mrf.mxu0 }
 0x5eb   :  { %v1236_v21 = vpop.f32.mrf.mxu2 }
 0x5ec   :  { %v1237_v4 = vadd.f32 %v1236_v21, %v1215_v52 }
 0x5ee   :  { %1551 = vrcp.f32 %v1237_v4  ;;  %v1273_v48 = vand.u32 2147483648, %v1237_v4  ;;  %v1271_v42 = vand.u32 2147483647, %v1237_v4  ;;  %vm1267_vm11 = vweird.f32 %v1237_v4 }
 0x5f0   :  { %v1274_v11 = vor.u32 1.1754944e-38, %v1273_v48  ;;  %vm1272_vm5 = vcmp.eq.f32.partialorder %v1271_v42, 8.507059e+37 }
 0x5f3   :  { %v1259_v0 = vpop.f32.mrf.mxu2 }
 0x5f4   :  { %v1552_v32 = vpop.eup %1551 }
 0x5f5   :  { %v1263_v23 = vmul.f32 %v1552_v32, %v1237_v4  ;;  %vm1268_vm1 = vweird.f32 %v1552_v32 }
 0x5f6   :  { %vm1269_vm3 = vmor %vm1267_vm11, %vm1268_vm1 }
 0x5f7   :  { %v1264_v16 = vsub.f32 1.0, %v1263_v23 }
 0x5f9   :  { %v1265_v54 = vmul.f32 %v1552_v32, %v1264_v16 }
 0x5fb   :  { %v1266_v9 = vadd.f32 %v1552_v32, %v1265_v54 }
 0x5fd   :  { %v1270_v36 = vsel %vm1269_vm3, %v1552_v32, %v1266_v9 }
 0x5fe   :  { %v1275_v44 = vsel %vm1272_vm5, %v1274_v11, %v1270_v36 }
 0x5ff   :  { %v1276_v15 = vmul.f32 %v1275_v44, %v1259_v0 }
 0x601   :  { %1479 = vmatmul.msk.f32.vlgmr.msra.gmra.mxu2 %vm837_vm10, %v1276_v15 }
 0x684   :  { %v1344_v8 = vpop.f32.mrf.mxu2 }
 0x685   :  { %v1345_v14 = vadd.f32 %v1344_v8, %v1321_v33 }
 0x687   :  { %v1348_v29 = vadd.f32 %v1347_v62, %v1345_v14 }
 0x689   :  { %v1350_v38 = vmul.f32 0.044715, %v1348_v29  ;;  %v1349_v41 = vmul.f32 0.5, %v1348_v29 }
 0x68b   :  { %v1351_v30 = vmul.f32 %v1350_v38, %v1348_v29 }
 0x68d   :  { %v1352_v20 = vmul.f32 %v1351_v30, %v1348_v29 }
 0x68f   :  { %v1353_v34 = vadd.f32 %v1352_v20, %v1348_v29 }
 0x691   :  { %v1354_v27 = vmul.f32 0.7978846, %v1353_v34 }
 0x693   :  { %1553 = vtanh.f32 %v1354_v27 }
 0x699   :  { %v1554_v37 = vpop.eup %1553 }
 0x69a   :  { %v1356_v43 = vadd.f32 1.0, %v1554_v37 }
 0x69c   :  { %v1357_v25 = vmul.f32 %v1356_v43, %v1349_v41 }
 0x69e   :  { %1480 = vmatmul.msk.f32.vlgmr.msrb.gmra.mxu3 %vm837_vm10, %v1357_v25 }
 0x721   :  { %v1379_v60 = vpop.f32.mrf.mxu3 }
 0x722   :  { %v1380_v35 = vadd.f32 %v1379_v60, %v1358_v45 }
 0x724   :  { %v1383_v46 = vmul.f32 0.044715, %v1380_v35  ;;  %v1382_v28 = vmul.f32 0.5, %v1380_v35 }
 0x726   :  { %v1384_v5 = vmul.f32 %v1383_v46, %v1380_v35 }
 0x728   :  { %v1385_v50 = vmul.f32 %v1384_v5, %v1380_v35 }
 0x72a   :  { %v1386_v13 = vadd.f32 %v1385_v50, %v1380_v35 }
 0x72c   :  { %v1387_v53 = vmul.f32 0.7978846, %v1386_v13 }
 0x72e   :  { %1555 = vtanh.f32 %v1387_v53 }
 0x734   :  { %v1556_v17 = vpop.eup %1555 }
 0x735   :  { %v1389_v57 = vadd.f32 1.0, %v1556_v17 }
 0x737   :  { %v1390_v7 = vmul.f32 %v1389_v57, %v1382_v28 }
 0x739   :  { %1481 = vmatmul.msk.f32.vlgmr.msra.gmra.mxu0 %vm837_vm10, %v1390_v7 }
 0x7b6   :  { %v1411_v24 = vpop.f32.mrf.mxu0 }
 0x7b7   :  { %1415 = vst.msk [vmem:[#allocation2] sm:$0x3] %vm1414_vm6, %v1411_v24 }
 0x7b8   :  { %1426 = dma.vmem_to_hbm [thread:$0]  %s1422_s14, 32, %s1424_s3, [#allocation3]  }
 0x7b9   :  { %1582 = dma.done.wait [#allocation3], 32  }
 0x7ba   :  { %1583 = vsyncadd [#allocation3], 4294967264 }
 0x7bb   :  { %1431 = vsyncpa [#allocation3], 1 }

</bundles_post_ra>
